<compile_context>
chip_gen: v6e
topology: v6e:2x2x1
jax: 0.10.0
libtpu: 0.0.40
codegen_flags: <defaults>
</compile_context>

<pallas_src>
import math

import jax
import jax.numpy as jnp
import numpy as np
from jax import lax
from jax.experimental import pallas as pl
from jax.experimental.pallas import tpu as pltpu

D_MODEL = 41
D_STATE = 16
D_CONV = 4
EXPAND = 2
D_INNER = EXPAND * D_MODEL            # 82
DT_RANK = math.ceil(D_MODEL / 16)     # 3


def _sigmoid(v):
    # exp goes to the EUP; approximate reciprocal also uses the EUP slot.
    return pl.reciprocal(1.0 + jnp.exp(-v), approx=True)


def _mamba_classify_kernel(
    x_ref,        # (Bt*L, D_MODEL)       tokens, batch-major flat
    w_in_x_ref,   # (D_MODEL, D_INNER)    in_proj, "x" half
    w_in_z_ref,   # (D_MODEL, D_INNER)    in_proj, "z" (gate) half
    conv_w_ref,   # (D_CONV, D_INNER)     depthwise conv weights (tap, channel)
    w_dt_ref,     # (D_INNER, D_INNER)    fused x_proj_dt @ dt_proj
    w_bc_ref,     # (D_INNER, 2*D_STATE)  fused [x_proj_B | x_proj_C]
    a_ref,        # (D_STATE, D_INNER)    A = -exp(A_log), state-major
    w_oc_ref,     # (D_INNER, NUM_LABELS) fused out_proj @ classifier
    vecs_ref,     # (3, D_INNER)          [conv_bias; dt_bias; D]
    b_cls_ref,    # (1, NUM_LABELS)
    o_ref,        # (Bt*L, NUM_LABELS)
    y_sc,         # VMEM scratch (Bt, L, D_INNER)
    *, seq_len,
):
    rows = x_ref.shape[0]
    L = seq_len
    bt = rows // L

    x = x_ref[...]                                                  # (Bt*L, D)

    # ---- in_proj (x branch / gate branch), batched over all tokens ----
    x_in = jnp.dot(x, w_in_x_ref[...], preferred_element_type=jnp.float32)
    z = jnp.dot(x, w_in_z_ref[...], preferred_element_type=jnp.float32)

    conv_b = vecs_ref[0:1, :]                                       # (1, D_INNER)
    b_dt = vecs_ref[1:2, :]                                         # (1, D_INNER)
    d_vec = vecs_ref[2:3, :]                                        # (1, D_INNER)

    # ---- causal depthwise conv1d + SiLU ----
    # Flat layout row = b*L + t; roll over rows and mask positions t < s so
    # each sequence is zero-padded independently.
    pos = lax.broadcasted_iota(jnp.int32, (bt, L, D_INNER), 1).reshape(
        rows, D_INNER)
    conv = jnp.zeros((rows, D_INNER), jnp.float32) + conv_b
    for k in range(D_CONV):
        s = D_CONV - 1 - k                    # how far back tap k looks
        if s == 0:
            tap = x_in
        else:
            tap = pltpu.roll(x_in, shift=s, axis=0)
            tap = jnp.where(pos >= s, tap, 0.0)
        conv = conv + tap * conv_w_ref[k:k + 1, :]
    x_act = conv * _sigmoid(conv)                                   # SiLU

    # ---- fused x_proj->dt_proj (softplus) and [B|C] projection ----
    dt = jax.nn.softplus(
        jnp.dot(x_act, w_dt_ref[...], preferred_element_type=jnp.float32)
        + b_dt)                                                     # (Bt*L, D_INNER)
    bc = jnp.dot(x_act, w_bc_ref[...], preferred_element_type=jnp.float32)

    dt3 = dt.reshape(bt, L, D_INNER)
    dtx3 = (dt * x_act).reshape(bt, L, D_INNER)
    b3 = bc[:, :D_STATE].reshape(bt, L, D_STATE)
    c3 = bc[:, D_STATE:2 * D_STATE].reshape(bt, L, D_STATE)

    a_b = a_ref[...][None, :, :]                                    # (1, N, D_INNER)

    # ---- selective scan: fully unrolled over L, batched over Bt ----
    h = jnp.zeros((bt, D_STATE, D_INNER), jnp.float32)
    for t in range(L):
        dt_t = dt3[:, t:t + 1, :]                                   # (Bt, 1, D_INNER)
        dtx_t = dtx3[:, t:t + 1, :]                                 # (Bt, 1, D_INNER)
        b_t = b3[:, t:t + 1, :]                                     # (Bt, 1, N)
        c_t = c3[:, t:t + 1, :]                                     # (Bt, 1, N)

        dA = jnp.exp(dt_t * a_b)                                    # (Bt, N, D_INNER)
        dBu = jnp.einsum('bkn,bkd->bnd', b_t, dtx_t,                # outer product
                         preferred_element_type=jnp.float32)
        h = dA * h + dBu
        y_t = jnp.einsum('bkn,bnd->bkd', c_t, h,                    # (Bt, 1, D_INNER)
                         preferred_element_type=jnp.float32)
        y_sc[:, pl.ds(t, 1), :] = y_t

    # ---- skip (D*u), gate with SiLU(z), fused out_proj+classifier ----
    y = y_sc[...].reshape(rows, D_INNER)
    y = (y + x_act * d_vec) * (z * _sigmoid(z))

    o_ref[...] = (jnp.dot(y, w_oc_ref[...], preferred_element_type=jnp.float32)
                  + b_cls_ref[...])


def mamba_classify(x, params, block_batch=None):
    (w_in_x, w_in_z, conv_w, conv_b, w_x_dt, w_x_B, w_x_C,
     w_dt, b_dt, A_log_T, D_vec, w_out, w_cls, b_cls) = params
    bsz, L, d_model = x.shape
    num_labels = w_cls.shape[1]

    # ---- offline parameter fusion (exact algebraic rewrites) ----
    w_dt_fused = jnp.dot(w_x_dt, w_dt)                      # (D_INNER, D_INNER)
    w_bc = jnp.concatenate([w_x_B, w_x_C], axis=1)          # (D_INNER, 2*D_STATE)
    a_t = -jnp.exp(A_log_T)                                 # (D_STATE, D_INNER)
    w_oc = jnp.dot(w_out, w_cls)                            # (D_INNER, num_labels)
    vecs = jnp.concatenate([conv_b, b_dt, D_vec], axis=0)   # (3, D_INNER)

    # ---- batch tiling: Bt sequences (Bt*L tokens) per grid step ----
    if block_batch is None:
        bt = max(1, min(bsz, 256 // max(L, 1)))             # aim ~256 MXU rows
    else:
        bt = max(1, min(block_batch, bsz))
    padded_b = -(-bsz // bt) * bt
    if padded_b != bsz:
        x = jnp.concatenate(
            [x, jnp.zeros((padded_b - bsz, L, d_model), x.dtype)], axis=0)
    x_flat = x.reshape(padded_b * L, d_model).astype(jnp.float32)

    rows = bt * L
    grid = (padded_b // bt,)
    weights = (w_in_x, w_in_z, conv_w, w_dt_fused, w_bc, a_t, w_oc, vecs, b_cls)

    def const_spec(a):
        return pl.BlockSpec(a.shape, lambda b: (0, 0))

    def kernel(*refs):
        return _mamba_classify_kernel(*refs, seq_len=L)

    out_flat = pl.pallas_call(
        kernel,
        out_shape=jax.ShapeDtypeStruct((padded_b * L, num_labels), jnp.float32),
        grid_spec=pltpu.PrefetchScalarGridSpec(
            num_scalar_prefetch=0,
            grid=grid,
            in_specs=[pl.BlockSpec((rows, d_model), lambda b: (b, 0))]
            + [const_spec(w) for w in weights],
            out_specs=pl.BlockSpec((rows, num_labels), lambda b: (b, 0)),
            scratch_shapes=[pltpu.VMEM((bt, L, D_INNER), jnp.float32)],
        ),
        compiler_params=pltpu.CompilerParams(
            dimension_semantics=("parallel",)),
    )(x_flat, *weights)
    return out_flat.reshape(padded_b, L, num_labels)[:bsz]


def _reference(x, params):
    """Pure-JAX reference of the same forward pass (numeric sanity check)."""
    (w_in_x, w_in_z, conv_w, conv_b, w_x_dt, w_x_B, w_x_C,
     w_dt, b_dt, A_log_T, D_vec, w_out, w_cls, b_cls) = params
    bsz, L, _ = x.shape
    x_in = x @ w_in_x
    z = x @ w_in_z
    x_pad = jnp.pad(x_in, ((0, 0), (D_CONV - 1, 0), (0, 0)))
    conv = jnp.zeros_like(x_in) + conv_b[None, :, :]
    for k in range(D_CONV):
        conv = conv + x_pad[:, k:k + L, :] * conv_w[k][None, None, :]
    x_act = jax.nn.silu(conv)
    dt = jax.nn.softplus(x_act @ w_x_dt @ w_dt + b_dt[None, :, :])
    Bm = x_act @ w_x_B
    Cm = x_act @ w_x_C
    A = -jnp.exp(A_log_T).T                                         # (D_INNER, N)

    def step(h, inp):
        dt_t, B_t, C_t, u_t = inp
        dA = jnp.exp(dt_t[:, :, None] * A[None])
        dBu = dt_t[:, :, None] * B_t[:, None, :] * u_t[:, :, None]
        h = dA * h + dBu
        y = jnp.einsum('bdn,bn->bd', h, C_t)
        return h, y

    h0 = jnp.zeros((bsz, D_INNER, D_STATE), jnp.float32)
    xs = (jnp.swapaxes(dt, 0, 1), jnp.swapaxes(Bm, 0, 1),
          jnp.swapaxes(Cm, 0, 1), jnp.swapaxes(x_act, 0, 1))
    _, ys = jax.lax.scan(step, h0, xs)
    y = jnp.swapaxes(ys, 0, 1) + x_act * D_vec[None]
    y = y * jax.nn.silu(z)
    out = y @ w_out
    return out @ w_cls + b_cls[None]


if __name__ == "__main__":
    num_labels = 5
    bsz, L = 2, 8

    root = jax.random.PRNGKey(0)
    keys = jax.random.split(root, 12)

    def init(k, shape, fan_in):
        return (jax.random.normal(k, shape, dtype=jnp.float32)
                / math.sqrt(fan_in)).astype(jnp.float32)

    w_in_x = init(keys[0], (D_MODEL, D_INNER), D_MODEL)
    w_in_z = init(keys[1], (D_MODEL, D_INNER), D_MODEL)
    conv_w = init(keys[2], (D_CONV, D_INNER), D_CONV)
    conv_b = init(keys[3], (1, D_INNER), D_CONV)
    w_x_dt = init(keys[4], (D_INNER, DT_RANK), D_INNER)
    w_x_B = init(keys[5], (D_INNER, D_STATE), D_INNER)
    w_x_C = init(keys[6], (D_INNER, D_STATE), D_INNER)
    w_dt = init(keys[7], (DT_RANK, D_INNER), DT_RANK)
    b_dt = jax.random.uniform(keys[8], (1, D_INNER), dtype=jnp.float32,
                              minval=-5.0, maxval=-3.0)
    A_log_T = jnp.tile(
        jnp.log(jnp.arange(1, D_STATE + 1, dtype=jnp.float32))[:, None],
        (1, D_INNER))                                               # (N, D_INNER)
    D_vec = jnp.ones((1, D_INNER), jnp.float32)
    w_out = init(keys[9], (D_INNER, D_MODEL), D_INNER)
    w_cls = init(keys[10], (D_MODEL, num_labels), D_MODEL)
    b_cls = jnp.zeros((1, num_labels), jnp.float32)

    params = (w_in_x, w_in_z, conv_w, conv_b, w_x_dt, w_x_B, w_x_C,
              w_dt, b_dt, A_log_T, D_vec, w_out, w_cls, b_cls)

    x = jax.random.normal(keys[11], (bsz, L, D_MODEL), dtype=jnp.float32)

    logits = jax.block_until_ready(mamba_classify(x, params))
    ref = jax.block_until_ready(_reference(x, params))
    np.testing.assert_allclose(np.asarray(logits), np.asarray(ref),
                               rtol=2e-2, atol=2e-2)
    print("KERNEL_OK")
</pallas_src>

<mosaic_0001>
module attributes {stable_mosaic.version = 11 : i64} {
  func.func @kernel(%arg0: i32, %arg1: memref<16x41xf32, #tpu.memory_space<vmem>>, %arg2: memref<41x82xf32, #tpu.memory_space<vmem>>, %arg3: memref<41x82xf32, #tpu.memory_space<vmem>>, %arg4: memref<4x82xf32, #tpu.memory_space<vmem>>, %arg5: memref<82x82xf32, #tpu.memory_space<vmem>>, %arg6: memref<82x32xf32, #tpu.memory_space<vmem>>, %arg7: memref<16x82xf32, #tpu.memory_space<vmem>>, %arg8: memref<82x5xf32, #tpu.memory_space<vmem>>, %arg9: memref<3x82xf32, #tpu.memory_space<vmem>>, %arg10: memref<1x5xf32, #tpu.memory_space<vmem>>, %arg11: memref<16x5xf32, #tpu.memory_space<vmem>>, %arg12: memref<2x8x82xf32, #tpu.memory_space<vmem>>) attributes {dimension_semantics = [#tpu.dimension_semantics<parallel>], iteration_bounds = array<i64: 1>, scalar_prefetch = 0 : i64, scratch_operands = 1 : i64, tpu.core_type = #tpu.core_type<tc>, window_params = [{transform_indices = @transform_0, window_bounds = array<i64: 16, 41>}, {pipeline_mode = #tpu.pipeline_mode<synchronous>, transform_indices = @transform_1, window_bounds = array<i64: 41, 82>}, {pipeline_mode = #tpu.pipeline_mode<synchronous>, transform_indices = @transform_2, window_bounds = array<i64: 41, 82>}, {pipeline_mode = #tpu.pipeline_mode<synchronous>, transform_indices = @transform_3, window_bounds = array<i64: 4, 82>}, {pipeline_mode = #tpu.pipeline_mode<synchronous>, transform_indices = @transform_4, window_bounds = array<i64: 82, 82>}, {pipeline_mode = #tpu.pipeline_mode<synchronous>, transform_indices = @transform_5, window_bounds = array<i64: 82, 32>}, {pipeline_mode = #tpu.pipeline_mode<synchronous>, transform_indices = @transform_6, window_bounds = array<i64: 16, 82>}, {pipeline_mode = #tpu.pipeline_mode<synchronous>, transform_indices = @transform_7, window_bounds = array<i64: 82, 5>}, {pipeline_mode = #tpu.pipeline_mode<synchronous>, transform_indices = @transform_8, window_bounds = array<i64: 3, 82>}, {pipeline_mode = #tpu.pipeline_mode<synchronous>, transform_indices = @transform_9, window_bounds = array<i64: 1, 5>}, {transform_indices = @transform_10, window_bounds = array<i64: 16, 5>}]} {
    %c0 = arith.constant 0 : index
    %c0_0 = arith.constant 0 : index
    %0 = vector.load %arg1[%c0, %c0_0] : memref<16x41xf32, #tpu.memory_space<vmem>>, vector<16x41xf32>
    %c0_1 = arith.constant 0 : index
    %c0_2 = arith.constant 0 : index
    %1 = vector.load %arg2[%c0_1, %c0_2] : memref<41x82xf32, #tpu.memory_space<vmem>>, vector<41x82xf32>
    %cst = arith.constant dense<0.000000e+00> : vector<16x82xf32>
    %2 = tpu.matmul %0, %1, %cst {dimension_numbers = #tpu.dot_dimension_numbers<[1], [0], [0], [1], [0, 0, 1, 1], [], []>} : vector<16x41xf32>, vector<41x82xf32>, vector<16x82xf32> -> vector<16x82xf32>
    %c0_3 = arith.constant 0 : index
    %c0_4 = arith.constant 0 : index
    %3 = vector.load %arg3[%c0_3, %c0_4] : memref<41x82xf32, #tpu.memory_space<vmem>>, vector<41x82xf32>
    %cst_5 = arith.constant dense<0.000000e+00> : vector<16x82xf32>
    %4 = tpu.matmul %0, %3, %cst_5 {dimension_numbers = #tpu.dot_dimension_numbers<[1], [0], [0], [1], [0, 0, 1, 1], [], []>} : vector<16x41xf32>, vector<41x82xf32>, vector<16x82xf32> -> vector<16x82xf32>
    %c0_6 = arith.constant 0 : index
    %c0_7 = arith.constant 0 : index
    %5 = vector.load %arg9[%c0_6, %c0_7] : memref<3x82xf32, #tpu.memory_space<vmem>>, vector<1x82xf32>
    %c1 = arith.constant 1 : index
    %c0_8 = arith.constant 0 : index
    %6 = vector.load %arg9[%c1, %c0_8] : memref<3x82xf32, #tpu.memory_space<vmem>>, vector<1x82xf32>
    %c2 = arith.constant 2 : index
    %c0_9 = arith.constant 0 : index
    %7 = vector.load %arg9[%c2, %c0_9] : memref<3x82xf32, #tpu.memory_space<vmem>>, vector<1x82xf32>
    %8 = tpu.iota {dimensions = array<i32: 1>} : vector<2x8x82xi32>
    %9 = vector.shape_cast %8 : vector<2x8x82xi32> to vector<16x82xi32>
    %cst_10 = arith.constant 0.000000e+00 : f32
    %10 = vector.broadcast %cst_10 : f32 to vector<16x82xf32>
    %11 = vector.broadcast %5 : vector<1x82xf32> to vector<16x82xf32>
    %12 = arith.addf %10, %11 : vector<16x82xf32>
    %c3_i32 = arith.constant 3 : i32
    %13 = tpu.dynamic_rotate %2 by %c3_i32 dim 0 : vector<16x82xf32>, i32 -> vector<16x82xf32>
    %c3_i32_11 = arith.constant 3 : i32
    %14 = vector.broadcast %c3_i32_11 : i32 to vector<16x82xi32>
    %15 = arith.cmpi sge, %9, %14 : vector<16x82xi32>
    %cst_12 = arith.constant 0.000000e+00 : f32
    %16 = vector.broadcast %cst_12 : f32 to vector<16x82xf32>
    %17 = arith.select %15, %13, %16 : vector<16x82xi1>, vector<16x82xf32>
    %c0_13 = arith.constant 0 : index
    %c0_14 = arith.constant 0 : index
    %18 = vector.load %arg4[%c0_13, %c0_14] : memref<4x82xf32, #tpu.memory_space<vmem>>, vector<1x82xf32>
    %19 = vector.broadcast %18 : vector<1x82xf32> to vector<16x82xf32>
    %20 = arith.mulf %17, %19 : vector<16x82xf32>
    %21 = arith.addf %12, %20 : vector<16x82xf32>
    %c2_i32 = arith.constant 2 : i32
    %22 = tpu.dynamic_rotate %2 by %c2_i32 dim 0 : vector<16x82xf32>, i32 -> vector<16x82xf32>
    %c2_i32_15 = arith.constant 2 : i32
    %23 = vector.broadcast %c2_i32_15 : i32 to vector<16x82xi32>
    %24 = arith.cmpi sge, %9, %23 : vector<16x82xi32>
    %cst_16 = arith.constant 0.000000e+00 : f32
    %25 = vector.broadcast %cst_16 : f32 to vector<16x82xf32>
    %26 = arith.select %24, %22, %25 : vector<16x82xi1>, vector<16x82xf32>
    %c1_17 = arith.constant 1 : index
    %c0_18 = arith.constant 0 : index
    %27 = vector.load %arg4[%c1_17, %c0_18] : memref<4x82xf32, #tpu.memory_space<vmem>>, vector<1x82xf32>
    %28 = vector.broadcast %27 : vector<1x82xf32> to vector<16x82xf32>
    %29 = arith.mulf %26, %28 : vector<16x82xf32>
    %30 = arith.addf %21, %29 : vector<16x82xf32>
    %c1_i32 = arith.constant 1 : i32
    %31 = tpu.dynamic_rotate %2 by %c1_i32 dim 0 : vector<16x82xf32>, i32 -> vector<16x82xf32>
    %c1_i32_19 = arith.constant 1 : i32
    %32 = vector.broadcast %c1_i32_19 : i32 to vector<16x82xi32>
    %33 = arith.cmpi sge, %9, %32 : vector<16x82xi32>
    %cst_20 = arith.constant 0.000000e+00 : f32
    %34 = vector.broadcast %cst_20 : f32 to vector<16x82xf32>
    %35 = arith.select %33, %31, %34 : vector<16x82xi1>, vector<16x82xf32>
    %c2_21 = arith.constant 2 : index
    %c0_22 = arith.constant 0 : index
    %36 = vector.load %arg4[%c2_21, %c0_22] : memref<4x82xf32, #tpu.memory_space<vmem>>, vector<1x82xf32>
    %37 = vector.broadcast %36 : vector<1x82xf32> to vector<16x82xf32>
    %38 = arith.mulf %35, %37 : vector<16x82xf32>
    %39 = arith.addf %30, %38 : vector<16x82xf32>
    %c3 = arith.constant 3 : index
    %c0_23 = arith.constant 0 : index
    %40 = vector.load %arg4[%c3, %c0_23] : memref<4x82xf32, #tpu.memory_space<vmem>>, vector<1x82xf32>
    %41 = vector.broadcast %40 : vector<1x82xf32> to vector<16x82xf32>
    %42 = arith.mulf %2, %41 : vector<16x82xf32>
    %43 = arith.addf %39, %42 : vector<16x82xf32>
    %cst_24 = arith.constant 0.000000e+00 : f32
    %44 = vector.broadcast %cst_24 : f32 to vector<16x82xf32>
    %45 = arith.subf %44, %43 : vector<16x82xf32>
    %46 = math.exp %45 : vector<16x82xf32>
    %cst_25 = arith.constant 1.000000e+00 : f32
    %47 = vector.broadcast %cst_25 : f32 to vector<16x82xf32>
    %48 = arith.addf %47, %46 : vector<16x82xf32>
    %49 = tpu.reciprocal %48 {approx = true} : vector<16x82xf32> -> vector<16x82xf32>
    %50 = arith.mulf %43, %49 : vector<16x82xf32>
    %c0_26 = arith.constant 0 : index
    %c0_27 = arith.constant 0 : index
    %51 = vector.load %arg5[%c0_26, %c0_27] : memref<82x82xf32, #tpu.memory_space<vmem>>, vector<82x82xf32>
    %cst_28 = arith.constant dense<0.000000e+00> : vector<16x82xf32>
    %52 = tpu.matmul %50, %51, %cst_28 {dimension_numbers = #tpu.dot_dimension_numbers<[1], [0], [0], [1], [0, 0, 1, 1], [], []>} : vector<16x82xf32>, vector<82x82xf32>, vector<16x82xf32> -> vector<16x82xf32>
    %53 = vector.broadcast %6 : vector<1x82xf32> to vector<16x82xf32>
    %54 = arith.addf %52, %53 : vector<16x82xf32>
    %cst_29 = arith.constant 0.000000e+00 : f32
    %55 = vector.broadcast %cst_29 : f32 to vector<16x82xf32>
    %56 = arith.maximumf %54, %55 : vector<16x82xf32>
    %57 = vector.broadcast %cst_29 : f32 to vector<16x82xf32>
    %58 = arith.subf %54, %57 : vector<16x82xf32>
    %59 = arith.cmpf one, %58, %58 : vector<16x82xf32>
    %60 = vector.broadcast %cst_29 : f32 to vector<16x82xf32>
    %61 = arith.addf %54, %60 : vector<16x82xf32>
    %62 = math.absf %58 : vector<16x82xf32>
    %cst_30 = arith.constant 0.000000e+00 : f32
    %63 = vector.broadcast %cst_30 : f32 to vector<16x82xf32>
    %64 = arith.subf %63, %62 : vector<16x82xf32>
    %65 = math.exp %64 : vector<16x82xf32>
    %66 = math.log1p %65 : vector<16x82xf32>
    %67 = arith.addf %56, %66 : vector<16x82xf32>
    %68 = arith.select %59, %61, %67 : vector<16x82xi1>, vector<16x82xf32>
    %c0_31 = arith.constant 0 : index
    %c0_32 = arith.constant 0 : index
    %69 = vector.load %arg6[%c0_31, %c0_32] : memref<82x32xf32, #tpu.memory_space<vmem>>, vector<82x32xf32>
    %cst_33 = arith.constant dense<0.000000e+00> : vector<16x32xf32>
    %70 = tpu.matmul %50, %69, %cst_33 {dimension_numbers = #tpu.dot_dimension_numbers<[1], [0], [0], [1], [0, 0, 1, 1], [], []>} : vector<16x82xf32>, vector<82x32xf32>, vector<16x32xf32> -> vector<16x32xf32>
    %71 = vector.shape_cast %68 : vector<16x82xf32> to vector<2x8x82xf32>
    %72 = arith.mulf %68, %50 : vector<16x82xf32>
    %73 = vector.shape_cast %72 : vector<16x82xf32> to vector<2x8x82xf32>
    %74 = vector.extract_strided_slice %70 {offsets = [0, 0], sizes = [16, 16], strides = [1, 1]} : vector<16x32xf32> to vector<16x16xf32>
    %75 = vector.shape_cast %74 : vector<16x16xf32> to vector<2x8x16xf32>
    %76 = vector.extract_strided_slice %70 {offsets = [0, 16], sizes = [16, 16], strides = [1, 1]} : vector<16x32xf32> to vector<16x16xf32>
    %77 = vector.shape_cast %76 : vector<16x16xf32> to vector<2x8x16xf32>
    %c0_34 = arith.constant 0 : index
    %c0_35 = arith.constant 0 : index
    %78 = vector.load %arg7[%c0_34, %c0_35] : memref<16x82xf32, #tpu.memory_space<vmem>>, vector<16x82xf32>
    %79 = vector.shape_cast %78 : vector<16x82xf32> to vector<1x16x82xf32>
    %cst_36 = arith.constant 0.000000e+00 : f32
    %80 = vector.broadcast %cst_36 : f32 to vector<2x16x82xf32>
    %81 = vector.extract_strided_slice %71 {offsets = [0, 0, 0], sizes = [2, 1, 82], strides = [1, 1, 1]} : vector<2x8x82xf32> to vector<2x1x82xf32>
    %82 = vector.extract_strided_slice %73 {offsets = [0, 0, 0], sizes = [2, 1, 82], strides = [1, 1, 1]} : vector<2x8x82xf32> to vector<2x1x82xf32>
    %83 = vector.extract_strided_slice %75 {offsets = [0, 0, 0], sizes = [2, 1, 16], strides = [1, 1, 1]} : vector<2x8x16xf32> to vector<2x1x16xf32>
    %84 = vector.extract_strided_slice %77 {offsets = [0, 0, 0], sizes = [2, 1, 16], strides = [1, 1, 1]} : vector<2x8x16xf32> to vector<2x1x16xf32>
    %85 = vector.broadcast %81 : vector<2x1x82xf32> to vector<2x16x82xf32>
    %86 = vector.broadcast %79 : vector<1x16x82xf32> to vector<2x16x82xf32>
    %87 = arith.mulf %85, %86 : vector<2x16x82xf32>
    %88 = math.exp %87 : vector<2x16x82xf32>
    "tpu.trace_start"() <{level = 10 : i32, message = "bkn,bkd->bnd"}> : () -> ()
    %cst_37 = arith.constant dense<0.000000e+00> : vector<2x16x82xf32>
    %89 = tpu.matmul %83, %82, %cst_37 {dimension_numbers = #tpu.dot_dimension_numbers<[1], [1], [2], [2], [0, 0, 0, 2, 1, 2], [0], [0]>} : vector<2x1x16xf32>, vector<2x1x82xf32>, vector<2x16x82xf32> -> vector<2x16x82xf32>
    "tpu.trace_stop"() : () -> ()
    %90 = arith.mulf %88, %80 : vector<2x16x82xf32>
    %91 = arith.addf %90, %89 : vector<2x16x82xf32>
    "tpu.trace_start"() <{level = 10 : i32, message = "bkn,bnd->bkd"}> : () -> ()
    %cst_38 = arith.constant dense<0.000000e+00> : vector<2x1x82xf32>
    %92 = tpu.matmul %84, %91, %cst_38 {dimension_numbers = #tpu.dot_dimension_numbers<[2], [1], [1], [2], [0, 0, 0, 1, 1, 2], [0], [0]>} : vector<2x1x16xf32>, vector<2x16x82xf32>, vector<2x1x82xf32> -> vector<2x1x82xf32>
    "tpu.trace_stop"() : () -> ()
    %c0_39 = arith.constant 0 : index
    %c0_40 = arith.constant 0 : index
    %c0_41 = arith.constant 0 : index
    %93 = vector.load %arg12[%c0_39, %c0_40, %c0_41] : memref<2x8x82xf32, #tpu.memory_space<vmem>>, vector<2x1x82xf32>
    tpu.vector_store %arg12[%c0_39, %c0_40, %c0_41], %92 {strides = array<i32>} : memref<2x8x82xf32, #tpu.memory_space<vmem>>, vector<2x1x82xf32>,
    %94 = vector.extract_strided_slice %71 {offsets = [0, 1, 0], sizes = [2, 1, 82], strides = [1, 1, 1]} : vector<2x8x82xf32> to vector<2x1x82xf32>
    %95 = vector.extract_strided_slice %73 {offsets = [0, 1, 0], sizes = [2, 1, 82], strides = [1, 1, 1]} : vector<2x8x82xf32> to vector<2x1x82xf32>
    %96 = vector.extract_strided_slice %75 {offsets = [0, 1, 0], sizes = [2, 1, 16], strides = [1, 1, 1]} : vector<2x8x16xf32> to vector<2x1x16xf32>
    %97 = vector.extract_strided_slice %77 {offsets = [0, 1, 0], sizes = [2, 1, 16], strides = [1, 1, 1]} : vector<2x8x16xf32> to vector<2x1x16xf32>
    %98 = vector.broadcast %94 : vector<2x1x82xf32> to vector<2x16x82xf32>
    %99 = vector.broadcast %79 : vector<1x16x82xf32> to vector<2x16x82xf32>
    %100 = arith.mulf %98, %99 : vector<2x16x82xf32>
    %101 = math.exp %100 : vector<2x16x82xf32>
    "tpu.trace_start"() <{level = 10 : i32, message = "bkn,bkd->bnd"}> : () -> ()
    %cst_42 = arith.constant dense<0.000000e+00> : vector<2x16x82xf32>
    %102 = tpu.matmul %96, %95, %cst_42 {dimension_numbers = #tpu.dot_dimension_numbers<[1], [1], [2], [2], [0, 0, 0, 2, 1, 2], [0], [0]>} : vector<2x1x16xf32>, vector<2x1x82xf32>, vector<2x16x82xf32> -> vector<2x16x82xf32>
    "tpu.trace_stop"() : () -> ()
    %103 = arith.mulf %101, %91 : vector<2x16x82xf32>
    %104 = arith.addf %103, %102 : vector<2x16x82xf32>
    "tpu.trace_start"() <{level = 10 : i32, message = "bkn,bnd->bkd"}> : () -> ()
    %cst_43 = arith.constant dense<0.000000e+00> : vector<2x1x82xf32>
    %105 = tpu.matmul %97, %104, %cst_43 {dimension_numbers = #tpu.dot_dimension_numbers<[2], [1], [1], [2], [0, 0, 0, 1, 1, 2], [0], [0]>} : vector<2x1x16xf32>, vector<2x16x82xf32>, vector<2x1x82xf32> -> vector<2x1x82xf32>
    "tpu.trace_stop"() : () -> ()
    %c0_44 = arith.constant 0 : index
    %c1_45 = arith.constant 1 : index
    %c0_46 = arith.constant 0 : index
    %106 = vector.load %arg12[%c0_44, %c1_45, %c0_46] : memref<2x8x82xf32, #tpu.memory_space<vmem>>, vector<2x1x82xf32>
    tpu.vector_store %arg12[%c0_44, %c1_45, %c0_46], %105 {strides = array<i32>} : memref<2x8x82xf32, #tpu.memory_space<vmem>>, vector<2x1x82xf32>,
    %107 = vector.extract_strided_slice %71 {offsets = [0, 2, 0], sizes = [2, 1, 82], strides = [1, 1, 1]} : vector<2x8x82xf32> to vector<2x1x82xf32>
    %108 = vector.extract_strided_slice %73 {offsets = [0, 2, 0], sizes = [2, 1, 82], strides = [1, 1, 1]} : vector<2x8x82xf32> to vector<2x1x82xf32>
    %109 = vector.extract_strided_slice %75 {offsets = [0, 2, 0], sizes = [2, 1, 16], strides = [1, 1, 1]} : vector<2x8x16xf32> to vector<2x1x16xf32>
    %110 = vector.extract_strided_slice %77 {offsets = [0, 2, 0], sizes = [2, 1, 16], strides = [1, 1, 1]} : vector<2x8x16xf32> to vector<2x1x16xf32>
    %111 = vector.broadcast %107 : vector<2x1x82xf32> to vector<2x16x82xf32>
    %112 = vector.broadcast %79 : vector<1x16x82xf32> to vector<2x16x82xf32>
    %113 = arith.mulf %111, %112 : vector<2x16x82xf32>
    %114 = math.exp %113 : vector<2x16x82xf32>
    "tpu.trace_start"() <{level = 10 : i32, message = "bkn,bkd->bnd"}> : () -> ()
    %cst_47 = arith.constant dense<0.000000e+00> : vector<2x16x82xf32>
    %115 = tpu.matmul %109, %108, %cst_47 {dimension_numbers = #tpu.dot_dimension_numbers<[1], [1], [2], [2], [0, 0, 0, 2, 1, 2], [0], [0]>} : vector<2x1x16xf32>, vector<2x1x82xf32>, vector<2x16x82xf32> -> vector<2x16x82xf32>
    "tpu.trace_stop"() : () -> ()
    %116 = arith.mulf %114, %104 : vector<2x16x82xf32>
    %117 = arith.addf %116, %115 : vector<2x16x82xf32>
    "tpu.trace_start"() <{level = 10 : i32, message = "bkn,bnd->bkd"}> : () -> ()
    %cst_48 = arith.constant dense<0.000000e+00> : vector<2x1x82xf32>
    %118 = tpu.matmul %110, %117, %cst_48 {dimension_numbers = #tpu.dot_dimension_numbers<[2], [1], [1], [2], [0, 0, 0, 1, 1, 2], [0], [0]>} : vector<2x1x16xf32>, vector<2x16x82xf32>, vector<2x1x82xf32> -> vector<2x1x82xf32>
    "tpu.trace_stop"() : () -> ()
    %c0_49 = arith.constant 0 : index
    %c2_50 = arith.constant 2 : index
    %c0_51 = arith.constant 0 : index
    %119 = vector.load %arg12[%c0_49, %c2_50, %c0_51] : memref<2x8x82xf32, #tpu.memory_space<vmem>>, vector<2x1x82xf32>
    tpu.vector_store %arg12[%c0_49, %c2_50, %c0_51], %118 {strides = array<i32>} : memref<2x8x82xf32, #tpu.memory_space<vmem>>, vector<2x1x82xf32>,
    %120 = vector.extract_strided_slice %71 {offsets = [0, 3, 0], sizes = [2, 1, 82], strides = [1, 1, 1]} : vector<2x8x82xf32> to vector<2x1x82xf32>
    %121 = vector.extract_strided_slice %73 {offsets = [0, 3, 0], sizes = [2, 1, 82], strides = [1, 1, 1]} : vector<2x8x82xf32> to vector<2x1x82xf32>
    %122 = vector.extract_strided_slice %75 {offsets = [0, 3, 0], sizes = [2, 1, 16], strides = [1, 1, 1]} : vector<2x8x16xf32> to vector<2x1x16xf32>
    %123 = vector.extract_strided_slice %77 {offsets = [0, 3, 0], sizes = [2, 1, 16], strides = [1, 1, 1]} : vector<2x8x16xf32> to vector<2x1x16xf32>
    %124 = vector.broadcast %120 : vector<2x1x82xf32> to vector<2x16x82xf32>
    %125 = vector.broadcast %79 : vector<1x16x82xf32> to vector<2x16x82xf32>
    %126 = arith.mulf %124, %125 : vector<2x16x82xf32>
    %127 = math.exp %126 : vector<2x16x82xf32>
    "tpu.trace_start"() <{level = 10 : i32, message = "bkn,bkd->bnd"}> : () -> ()
    %cst_52 = arith.constant dense<0.000000e+00> : vector<2x16x82xf32>
    %128 = tpu.matmul %122, %121, %cst_52 {dimension_numbers = #tpu.dot_dimension_numbers<[1], [1], [2], [2], [0, 0, 0, 2, 1, 2], [0], [0]>} : vector<2x1x16xf32>, vector<2x1x82xf32>, vector<2x16x82xf32> -> vector<2x16x82xf32>
    "tpu.trace_stop"() : () -> ()
    %129 = arith.mulf %127, %117 : vector<2x16x82xf32>
    %130 = arith.addf %129, %128 : vector<2x16x82xf32>
    "tpu.trace_start"() <{level = 10 : i32, message = "bkn,bnd->bkd"}> : () -> ()
    %cst_53 = arith.constant dense<0.000000e+00> : vector<2x1x82xf32>
    %131 = tpu.matmul %123, %130, %cst_53 {dimension_numbers = #tpu.dot_dimension_numbers<[2], [1], [1], [2], [0, 0, 0, 1, 1, 2], [0], [0]>} : vector<2x1x16xf32>, vector<2x16x82xf32>, vector<2x1x82xf32> -> vector<2x1x82xf32>
    "tpu.trace_stop"() : () -> ()
    %c0_54 = arith.constant 0 : index
    %c3_55 = arith.constant 3 : index
    %c0_56 = arith.constant 0 : index
    %132 = vector.load %arg12[%c0_54, %c3_55, %c0_56] : memref<2x8x82xf32, #tpu.memory_space<vmem>>, vector<2x1x82xf32>
    tpu.vector_store %arg12[%c0_54, %c3_55, %c0_56], %131 {strides = array<i32>} : memref<2x8x82xf32, #tpu.memory_space<vmem>>, vector<2x1x82xf32>,
    %133 = vector.extract_strided_slice %71 {offsets = [0, 4, 0], sizes = [2, 1, 82], strides = [1, 1, 1]} : vector<2x8x82xf32> to vector<2x1x82xf32>
    %134 = vector.extract_strided_slice %73 {offsets = [0, 4, 0], sizes = [2, 1, 82], strides = [1, 1, 1]} : vector<2x8x82xf32> to vector<2x1x82xf32>
    %135 = vector.extract_strided_slice %75 {offsets = [0, 4, 0], sizes = [2, 1, 16], strides = [1, 1, 1]} : vector<2x8x16xf32> to vector<2x1x16xf32>
    %136 = vector.extract_strided_slice %77 {offsets = [0, 4, 0], sizes = [2, 1, 16], strides = [1, 1, 1]} : vector<2x8x16xf32> to vector<2x1x16xf32>
    %137 = vector.broadcast %133 : vector<2x1x82xf32> to vector<2x16x82xf32>
    %138 = vector.broadcast %79 : vector<1x16x82xf32> to vector<2x16x82xf32>
    %139 = arith.mulf %137, %138 : vector<2x16x82xf32>
    %140 = math.exp %139 : vector<2x16x82xf32>
    "tpu.trace_start"() <{level = 10 : i32, message = "bkn,bkd->bnd"}> : () -> ()
    %cst_57 = arith.constant dense<0.000000e+00> : vector<2x16x82xf32>
    %141 = tpu.matmul %135, %134, %cst_57 {dimension_numbers = #tpu.dot_dimension_numbers<[1], [1], [2], [2], [0, 0, 0, 2, 1, 2], [0], [0]>} : vector<2x1x16xf32>, vector<2x1x82xf32>, vector<2x16x82xf32> -> vector<2x16x82xf32>
    "tpu.trace_stop"() : () -> ()
    %142 = arith.mulf %140, %130 : vector<2x16x82xf32>
    %143 = arith.addf %142, %141 : vector<2x16x82xf32>
    "tpu.trace_start"() <{level = 10 : i32, message = "bkn,bnd->bkd"}> : () -> ()
    %cst_58 = arith.constant dense<0.000000e+00> : vector<2x1x82xf32>
    %144 = tpu.matmul %136, %143, %cst_58 {dimension_numbers = #tpu.dot_dimension_numbers<[2], [1], [1], [2], [0, 0, 0, 1, 1, 2], [0], [0]>} : vector<2x1x16xf32>, vector<2x16x82xf32>, vector<2x1x82xf32> -> vector<2x1x82xf32>
    "tpu.trace_stop"() : () -> ()
    %c0_59 = arith.constant 0 : index
    %c4 = arith.constant 4 : index
    %c0_60 = arith.constant 0 : index
    %145 = vector.load %arg12[%c0_59, %c4, %c0_60] : memref<2x8x82xf32, #tpu.memory_space<vmem>>, vector<2x1x82xf32>
    tpu.vector_store %arg12[%c0_59, %c4, %c0_60], %144 {strides = array<i32>} : memref<2x8x82xf32, #tpu.memory_space<vmem>>, vector<2x1x82xf32>,
    %146 = vector.extract_strided_slice %71 {offsets = [0, 5, 0], sizes = [2, 1, 82], strides = [1, 1, 1]} : vector<2x8x82xf32> to vector<2x1x82xf32>
    %147 = vector.extract_strided_slice %73 {offsets = [0, 5, 0], sizes = [2, 1, 82], strides = [1, 1, 1]} : vector<2x8x82xf32> to vector<2x1x82xf32>
    %148 = vector.extract_strided_slice %75 {offsets = [0, 5, 0], sizes = [2, 1, 16], strides = [1, 1, 1]} : vector<2x8x16xf32> to vector<2x1x16xf32>
    %149 = vector.extract_strided_slice %77 {offsets = [0, 5, 0], sizes = [2, 1, 16], strides = [1, 1, 1]} : vector<2x8x16xf32> to vector<2x1x16xf32>
    %150 = vector.broadcast %146 : vector<2x1x82xf32> to vector<2x16x82xf32>
    %151 = vector.broadcast %79 : vector<1x16x82xf32> to vector<2x16x82xf32>
    %152 = arith.mulf %150, %151 : vector<2x16x82xf32>
    %153 = math.exp %152 : vector<2x16x82xf32>
    "tpu.trace_start"() <{level = 10 : i32, message = "bkn,bkd->bnd"}> : () -> ()
    %cst_61 = arith.constant dense<0.000000e+00> : vector<2x16x82xf32>
    %154 = tpu.matmul %148, %147, %cst_61 {dimension_numbers = #tpu.dot_dimension_numbers<[1], [1], [2], [2], [0, 0, 0, 2, 1, 2], [0], [0]>} : vector<2x1x16xf32>, vector<2x1x82xf32>, vector<2x16x82xf32> -> vector<2x16x82xf32>
    "tpu.trace_stop"() : () -> ()
    %155 = arith.mulf %153, %143 : vector<2x16x82xf32>
    %156 = arith.addf %155, %154 : vector<2x16x82xf32>
    "tpu.trace_start"() <{level = 10 : i32, message = "bkn,bnd->bkd"}> : () -> ()
    %cst_62 = arith.constant dense<0.000000e+00> : vector<2x1x82xf32>
    %157 = tpu.matmul %149, %156, %cst_62 {dimension_numbers = #tpu.dot_dimension_numbers<[2], [1], [1], [2], [0, 0, 0, 1, 1, 2], [0], [0]>} : vector<2x1x16xf32>, vector<2x16x82xf32>, vector<2x1x82xf32> -> vector<2x1x82xf32>
    "tpu.trace_stop"() : () -> ()
    %c0_63 = arith.constant 0 : index
    %c5 = arith.constant 5 : index
    %c0_64 = arith.constant 0 : index
    %158 = vector.load %arg12[%c0_63, %c5, %c0_64] : memref<2x8x82xf32, #tpu.memory_space<vmem>>, vector<2x1x82xf32>
    tpu.vector_store %arg12[%c0_63, %c5, %c0_64], %157 {strides = array<i32>} : memref<2x8x82xf32, #tpu.memory_space<vmem>>, vector<2x1x82xf32>,
    %159 = vector.extract_strided_slice %71 {offsets = [0, 6, 0], sizes = [2, 1, 82], strides = [1, 1, 1]} : vector<2x8x82xf32> to vector<2x1x82xf32>
    %160 = vector.extract_strided_slice %73 {offsets = [0, 6, 0], sizes = [2, 1, 82], strides = [1, 1, 1]} : vector<2x8x82xf32> to vector<2x1x82xf32>
    %161 = vector.extract_strided_slice %75 {offsets = [0, 6, 0], sizes = [2, 1, 16], strides = [1, 1, 1]} : vector<2x8x16xf32> to vector<2x1x16xf32>
    %162 = vector.extract_strided_slice %77 {offsets = [0, 6, 0], sizes = [2, 1, 16], strides = [1, 1, 1]} : vector<2x8x16xf32> to vector<2x1x16xf32>
    %163 = vector.broadcast %159 : vector<2x1x82xf32> to vector<2x16x82xf32>
    %164 = vector.broadcast %79 : vector<1x16x82xf32> to vector<2x16x82xf32>
    %165 = arith.mulf %163, %164 : vector<2x16x82xf32>
    %166 = math.exp %165 : vector<2x16x82xf32>
    "tpu.trace_start"() <{level = 10 : i32, message = "bkn,bkd->bnd"}> : () -> ()
    %cst_65 = arith.constant dense<0.000000e+00> : vector<2x16x82xf32>
    %167 = tpu.matmul %161, %160, %cst_65 {dimension_numbers = #tpu.dot_dimension_numbers<[1], [1], [2], [2], [0, 0, 0, 2, 1, 2], [0], [0]>} : vector<2x1x16xf32>, vector<2x1x82xf32>, vector<2x16x82xf32> -> vector<2x16x82xf32>
    "tpu.trace_stop"() : () -> ()
    %168 = arith.mulf %166, %156 : vector<2x16x82xf32>
    %169 = arith.addf %168, %167 : vector<2x16x82xf32>
    "tpu.trace_start"() <{level = 10 : i32, message = "bkn,bnd->bkd"}> : () -> ()
    %cst_66 = arith.constant dense<0.000000e+00> : vector<2x1x82xf32>
    %170 = tpu.matmul %162, %169, %cst_66 {dimension_numbers = #tpu.dot_dimension_numbers<[2], [1], [1], [2], [0, 0, 0, 1, 1, 2], [0], [0]>} : vector<2x1x16xf32>, vector<2x16x82xf32>, vector<2x1x82xf32> -> vector<2x1x82xf32>
    "tpu.trace_stop"() : () -> ()
    %c0_67 = arith.constant 0 : index
    %c6 = arith.constant 6 : index
    %c0_68 = arith.constant 0 : index
    %171 = vector.load %arg12[%c0_67, %c6, %c0_68] : memref<2x8x82xf32, #tpu.memory_space<vmem>>, vector<2x1x82xf32>
    tpu.vector_store %arg12[%c0_67, %c6, %c0_68], %170 {strides = array<i32>} : memref<2x8x82xf32, #tpu.memory_space<vmem>>, vector<2x1x82xf32>,
    %172 = vector.extract_strided_slice %71 {offsets = [0, 7, 0], sizes = [2, 1, 82], strides = [1, 1, 1]} : vector<2x8x82xf32> to vector<2x1x82xf32>
    %173 = vector.extract_strided_slice %73 {offsets = [0, 7, 0], sizes = [2, 1, 82], strides = [1, 1, 1]} : vector<2x8x82xf32> to vector<2x1x82xf32>
    %174 = vector.extract_strided_slice %75 {offsets = [0, 7, 0], sizes = [2, 1, 16], strides = [1, 1, 1]} : vector<2x8x16xf32> to vector<2x1x16xf32>
    %175 = vector.extract_strided_slice %77 {offsets = [0, 7, 0], sizes = [2, 1, 16], strides = [1, 1, 1]} : vector<2x8x16xf32> to vector<2x1x16xf32>
    %176 = vector.broadcast %172 : vector<2x1x82xf32> to vector<2x16x82xf32>
    %177 = vector.broadcast %79 : vector<1x16x82xf32> to vector<2x16x82xf32>
    %178 = arith.mulf %176, %177 : vector<2x16x82xf32>
    %179 = math.exp %178 : vector<2x16x82xf32>
    "tpu.trace_start"() <{level = 10 : i32, message = "bkn,bkd->bnd"}> : () -> ()
    %cst_69 = arith.constant dense<0.000000e+00> : vector<2x16x82xf32>
    %180 = tpu.matmul %174, %173, %cst_69 {dimension_numbers = #tpu.dot_dimension_numbers<[1], [1], [2], [2], [0, 0, 0, 2, 1, 2], [0], [0]>} : vector<2x1x16xf32>, vector<2x1x82xf32>, vector<2x16x82xf32> -> vector<2x16x82xf32>
    "tpu.trace_stop"() : () -> ()
    %181 = arith.mulf %179, %169 : vector<2x16x82xf32>
    %182 = arith.addf %181, %180 : vector<2x16x82xf32>
    "tpu.trace_start"() <{level = 10 : i32, message = "bkn,bnd->bkd"}> : () -> ()
    %cst_70 = arith.constant dense<0.000000e+00> : vector<2x1x82xf32>
    %183 = tpu.matmul %175, %182, %cst_70 {dimension_numbers = #tpu.dot_dimension_numbers<[2], [1], [1], [2], [0, 0, 0, 1, 1, 2], [0], [0]>} : vector<2x1x16xf32>, vector<2x16x82xf32>, vector<2x1x82xf32> -> vector<2x1x82xf32>
    "tpu.trace_stop"() : () -> ()
    %c0_71 = arith.constant 0 : index
    %c7 = arith.constant 7 : index
    %c0_72 = arith.constant 0 : index
    %184 = vector.load %arg12[%c0_71, %c7, %c0_72] : memref<2x8x82xf32, #tpu.memory_space<vmem>>, vector<2x1x82xf32>
    tpu.vector_store %arg12[%c0_71, %c7, %c0_72], %183 {strides = array<i32>} : memref<2x8x82xf32, #tpu.memory_space<vmem>>, vector<2x1x82xf32>,
    %c0_73 = arith.constant 0 : index
    %c0_74 = arith.constant 0 : index
    %c0_75 = arith.constant 0 : index
    %185 = vector.load %arg12[%c0_73, %c0_74, %c0_75] : memref<2x8x82xf32, #tpu.memory_space<vmem>>, vector<2x8x82xf32>
    %186 = vector.shape_cast %185 : vector<2x8x82xf32> to vector<16x82xf32>
    %187 = vector.broadcast %7 : vector<1x82xf32> to vector<16x82xf32>
    %188 = arith.mulf %50, %187 : vector<16x82xf32>
    %189 = arith.addf %186, %188 : vector<16x82xf32>
    %cst_76 = arith.constant 0.000000e+00 : f32
    %190 = vector.broadcast %cst_76 : f32 to vector<16x82xf32>
    %191 = arith.subf %190, %4 : vector<16x82xf32>
    %192 = math.exp %191 : vector<16x82xf32>
    %cst_77 = arith.constant 1.000000e+00 : f32
    %193 = vector.broadcast %cst_77 : f32 to vector<16x82xf32>
    %194 = arith.addf %193, %192 : vector<16x82xf32>
    %195 = tpu.reciprocal %194 {approx = true} : vector<16x82xf32> -> vector<16x82xf32>
    %196 = arith.mulf %4, %195 : vector<16x82xf32>
    %197 = arith.mulf %189, %196 : vector<16x82xf32>
    %c0_78 = arith.constant 0 : index
    %c0_79 = arith.constant 0 : index
    %198 = vector.load %arg8[%c0_78, %c0_79] : memref<82x5xf32, #tpu.memory_space<vmem>>, vector<82x5xf32>
    %cst_80 = arith.constant dense<0.000000e+00> : vector<16x5xf32>
    %199 = tpu.matmul %197, %198, %cst_80 {dimension_numbers = #tpu.dot_dimension_numbers<[1], [0], [0], [1], [0, 0, 1, 1], [], []>} : vector<16x82xf32>, vector<82x5xf32>, vector<16x5xf32> -> vector<16x5xf32>
    %c0_81 = arith.constant 0 : index
    %c0_82 = arith.constant 0 : index
    %200 = vector.load %arg10[%c0_81, %c0_82] : memref<1x5xf32, #tpu.memory_space<vmem>>, vector<1x5xf32>
    %201 = vector.broadcast %200 : vector<1x5xf32> to vector<16x5xf32>
    %202 = arith.addf %199, %201 : vector<16x5xf32>
    %c0_83 = arith.constant 0 : index
    %c0_84 = arith.constant 0 : index
    %203 = vector.load %arg11[%c0_83, %c0_84] : memref<16x5xf32, #tpu.memory_space<vmem>>, vector<16x5xf32>
    tpu.vector_store %arg11[%c0_83, %c0_84], %202 {strides = array<i32>} : memref<16x5xf32, #tpu.memory_space<vmem>>, vector<16x5xf32>,
    return
  }
  func.func @transform_0(%arg0: i32) -> (i32, i32) {
    %c0_i32 = arith.constant 0 : i32
    %c0_i32_0 = arith.constant 0 : i32
    return %arg0, %c0_i32 : i32, i32
  }
  func.func @transform_1(%arg0: i32) -> (i32, i32) {
    %c0_i32 = arith.constant 0 : i32
    %c0_i32_0 = arith.constant 0 : i32
    %c0_i32_1 = arith.constant 0 : i32
    return %c0_i32, %c0_i32_0 : i32, i32
  }
  func.func @transform_2(%arg0: i32) -> (i32, i32) {
    %c0_i32 = arith.constant 0 : i32
    %c0_i32_0 = arith.constant 0 : i32
    %c0_i32_1 = arith.constant 0 : i32
    return %c0_i32, %c0_i32_0 : i32, i32
  }
  func.func @transform_3(%arg0: i32) -> (i32, i32) {
    %c0_i32 = arith.constant 0 : i32
    %c0_i32_0 = arith.constant 0 : i32
    %c0_i32_1 = arith.constant 0 : i32
    return %c0_i32, %c0_i32_0 : i32, i32
  }
  func.func @transform_4(%arg0: i32) -> (i32, i32) {
    %c0_i32 = arith.constant 0 : i32
    %c0_i32_0 = arith.constant 0 : i32
    %c0_i32_1 = arith.constant 0 : i32
    return %c0_i32, %c0_i32_0 : i32, i32
  }
  func.func @transform_5(%arg0: i32) -> (i32, i32) {
    %c0_i32 = arith.constant 0 : i32
    %c0_i32_0 = arith.constant 0 : i32
    %c0_i32_1 = arith.constant 0 : i32
    return %c0_i32, %c0_i32_0 : i32, i32
  }
  func.func @transform_6(%arg0: i32) -> (i32, i32) {
    %c0_i32 = arith.constant 0 : i32
    %c0_i32_0 = arith.constant 0 : i32
    %c0_i32_1 = arith.constant 0 : i32
    return %c0_i32, %c0_i32_0 : i32, i32
  }
  func.func @transform_7(%arg0: i32) -> (i32, i32) {
    %c0_i32 = arith.constant 0 : i32
    %c0_i32_0 = arith.constant 0 : i32
    %c0_i32_1 = arith.constant 0 : i32
    return %c0_i32, %c0_i32_0 : i32, i32
  }
  func.func @transform_8(%arg0: i32) -> (i32, i32) {
    %c0_i32 = arith.constant 0 : i32
    %c0_i32_0 = arith.constant 0 : i32
    %c0_i32_1 = arith.constant 0 : i32
    return %c0_i32, %c0_i32_0 : i32, i32
  }
  func.func @transform_9(%arg0: i32) -> (i32, i32) {
    %c0_i32 = arith.constant 0 : i32
    %c0_i32_0 = arith.constant 0 : i32
    %c0_i32_1 = arith.constant 0 : i32
    return %c0_i32, %c0_i32_0 : i32, i32
  }
  func.func @transform_10(%arg0: i32) -> (i32, i32) {
    %c0_i32 = arith.constant 0 : i32
    %c0_i32_0 = arith.constant 0 : i32
    return %arg0, %c0_i32 : i32, i32
  }
}

</mosaic_0001>

<bundles_post_ra>
// kernel: tpu_custom_call.1
= control target key start
LH: loop header
LB: loop body
LE: loop exit
PB: predicated region body
PF: predicated region fallthrough
CT: control target
= control target key end

     0   :  { %15 = vsyncpa [#allocation4], 0  ;;  %s4633_s13 = smov [#allocation3]   ;;  %s5314_s0 = inlined_call_operand.vmem [shape: f32[16,41], index: 0, kind: input, shape index: {}]   ;;  %s5315_s1 = inlined_call_operand.vmem [shape: f32[41,82], index: 1, kind: input, shape index: {}]   ;;  %s5316_s2 = inlined_call_operand.vmem [shape: f32[41,82], index: 2, kind: input, shape index: {}]   ;;  %s5317_s3 = inlined_call_operand.hbm [shape: f32[4,82], index: 3, kind: input, shape index: {}]   ;;  %s5318_s4 = inlined_call_operand.vmem [shape: f32[82,82], index: 4, kind: input, shape index: {}]   ;;  %s5319_s5 = inlined_call_operand.vmem [shape: f32[82,32], index: 5, kind: input, shape index: {}]   ;;  %s5320_s6 = inlined_call_operand.vmem [shape: f32[16,82], index: 6, kind: input, shape index: {}]   ;;  %s5321_s7 = inlined_call_operand.vmem [shape: f32[82,5], index: 7, kind: input, shape index: {}]   ;;  %s5322_s8 = inlined_call_operand.vmem [shape: f32[3,82], index: 8, kind: input, shape index: {}]   ;;  %s5323_s9 = inlined_call_operand.vmem [shape: f32[1,5], index: 9, kind: input, shape index: {}]   ;;  %s5324_s10 = inlined_call_operand.vmem [shape: f32[16,5], index: 10, kind: output, shape index: {}]  }
   0x1   :  { %s28_s14 = sshll.u32 %s4633_s13, 4  ;;  %s29_s14 = int_to_ptr.vmem [resolvable:$true] %s28_s14 }
   0x2   :  { %s4619_s15 = scalar_lea.vmem %s29_s14, 64  ;;  %p4624_p1 = scmp.lt.s32.totalorder %s29_s14, %s29_s14 }
   0x3   :  { %p4620_p0 = scmp.ne.s32.totalorder %s29_s14, %s4619_s15  ;;  %p4625_p2 = scmp.lt.s32.totalorder %s4619_s15, %s4619_s15 }
   0x5   :  { %p4626_p3 = por %p4625_p2, %p4624_p1 }
   0x7   :  { %p4627_p4 = pnand %p4626_p3, %p4620_p0 }
   0x9   :  { %4630 = shalt.err (!%p4627_p4)
}
   0xa   :  { %31 = dma.hbm_to_vmem [thread:$0]  %s5317_s3, 64, %s29_s14, [#allocation4]  }
   0xb   :  { %4631 = dma.done.wait [#allocation4], 64  }
   0xc   :  { %4632 = vsyncadd [#allocation4], 4294967232  ;;  %vm62_vm0 = vcmask 1040384   ;;  %v54_v0 = vld [vmem:[%s5315_s1 + $0x28] sm:$0x1]  ;;  %v53_v1 = vld [vmem:[%s5315_s1 + $0x20] sm:$0xff]  ;;  %v228_v36 = vlaneseq }
   0xd   :  { %vm55_vm1 = vcmask 334848   ;;  %4222 = vmatprep.subr.msk.mxu1 %vm62_vm0, %v54_v0  ;;  %v52_v2 = vld [vmem:[%s5315_s1 + $0x18] sm:$0xff]  ;;  %v47_v3 = vld [vmem:[%s5314_s0] sm:$0xff]  ;;  %v51_v4 = vld [vmem:[%s5315_s1 + $0x10] sm:$0xff]  ;;  %vm329_vm2 = vcmask 1041408   ;;  %vm322_vm9 = vcmask 670720  }
   0xe   :  { %4223 = vmatpush3.msk.msra.mxu1 %vm62_vm0, %v54_v0  ;;  %4234 = vmatprep.mubr.msk.f32.mxu1 %vm55_vm1, %v47_v3  ;;  %v50_v5 = vld [vmem:[%s5315_s1 + $0x8] sm:$0xff]  ;;  %v49_v6 = vld [vmem:[%s5315_s1] sm:$0xff]  ;;  %v144_v10 = vld [vmem:[%s5316_s2 + $0x18] sm:$0xff]  ;;  %v4815_v37 = vshrl.u32 %v228_v36, 7  ;;  %s4634_s21 = smov 112   ;;  %vm589_vm14 = vcmask 7168  }
   0xf   :  { %4224 = vmatprep.subr.mxu1 %v53_v1  ;;  %v48_v7 = vld [vmem:[%s5314_s0 + $0x8] sm:$0xff]  ;;  %v145_v9 = vld [vmem:[%s5316_s2 + $0x20] sm:$0xff]  ;;  %v143_v11 = vld [vmem:[%s5316_s2 + $0x10] sm:$0xff]  ;;  %vm4636_vm15 = vmmov 0  }
  0x10   :  { %4225 = vmatpush3.msra.mxu1 %v53_v1  ;;  %v146_v8 = vld [vmem:[%s5316_s2 + $0x28] sm:$0x1]  ;;  %v141_v13 = vld [vmem:[%s5316_s2] sm:$0xff]  ;;  %v317_v14 = vld [vmem:[%s5318_s4 + $0x50] sm:$0x3]  ;;  %vm237_vm3 = vcmp.lt.s32.totalorder %v4815_v37, 3 }
  0x11   :  { %4226 = vmatprep.subr.mxu1 %v52_v2  ;;  %v142_v12 = vld [vmem:[%s5316_s2 + $0x8] sm:$0xff]  ;;  %v454_v15 = vld [vmem:[%s5319_s5 + $0x50] sm:$0x3]  ;;  %4252 = vmatprep.subr.msk.mxu0 %vm329_vm2, %v317_v14  ;;  %v315_v18 = vld [vmem:[%s5318_s4 + $0x40] sm:$0xff]  ;;  %vm240_vm4 = vcmp.ge.s32.totalorder %v4815_v37, 3  ;;  %vm254_vm5 = vcmp.lt.s32.totalorder %v4815_v37, 2 }
  0x12   :  { %4227 = vmatpush3.msra.mxu1 %v52_v2  ;;  %4253 = vmatpush3.msk.msra.mxu0 %vm329_vm2, %v317_v14  ;;  %v316_v16 = vld [vmem:[%s5318_s4 + $0x48] sm:$0xff]  ;;  %v452_v19 = vld [vmem:[%s5319_s5 + $0x40] sm:$0xff]  ;;  %v314_v20 = vld [vmem:[%s5318_s4 + $0x38] sm:$0xff]  ;;  %vm257_vm6 = vcmp.ge.s32.totalorder %v4815_v37, 2  ;;  %vm271_vm7 = vcmp.lt.s32.totalorder %v4815_v37, 1  ;;  %vm274_vm8 = vcmp.ge.s32.totalorder %v4815_v37, 1 }
  0x13   :  { %4228 = vmatprep.subr.mxu1 %v51_v4  ;;  %v453_v17 = vld [vmem:[%s5319_s5 + $0x48] sm:$0xff]  ;;  %4254 = vmatprep.subr.mxu0 %v316_v16  ;;  %v451_v21 = vld [vmem:[%s5319_s5 + $0x38] sm:$0xff]  ;;  %v313_v22 = vld [vmem:[%s5318_s4 + $0x30] sm:$0xff] }
  0x14   :  { %4229 = vmatpush3.msra.mxu1 %v51_v4  ;;  %4255 = vmatpush3.msra.mxu0 %v316_v16  ;;  %v450_v23 = vld [vmem:[%s5319_s5 + $0x30] sm:$0xff]  ;;  %v312_v24 = vld [vmem:[%s5318_s4 + $0x28] sm:$0xff]  ;;  %v311_v26 = vld [vmem:[%s5318_s4 + $0x20] sm:$0xff] }
  0x15   :  { %4230 = vmatprep.subr.mxu1 %v50_v5  ;;  %4256 = vmatprep.subr.mxu0 %v315_v18  ;;  %v449_v25 = vld [vmem:[%s5319_s5 + $0x28] sm:$0xff]  ;;  %v448_v27 = vld [vmem:[%s5319_s5 + $0x20] sm:$0xff]  ;;  %v310_v28 = vld [vmem:[%s5318_s4 + $0x18] sm:$0xff] }
  0x16   :  { %4231 = vmatpush3.msra.mxu1 %v50_v5  ;;  %4257 = vmatpush3.msra.mxu0 %v315_v18  ;;  %v447_v29 = vld [vmem:[%s5319_s5 + $0x18] sm:$0xff]  ;;  %v309_v30 = vld [vmem:[%s5318_s4 + $0x10] sm:$0xff]  ;;  %v308_v32 = vld [vmem:[%s5318_s4 + $0x8] sm:$0xff] }
  0x17   :  { %4232 = vmatprep.subr.mxu1 %v49_v6  ;;  %4258 = vmatprep.subr.mxu0 %v314_v20  ;;  %v446_v31 = vld [vmem:[%s5319_s5 + $0x10] sm:$0xff]  ;;  %v445_v33 = vld [vmem:[%s5319_s5 + $0x8] sm:$0xff]  ;;  %v307_v34 = vld [vmem:[%s5318_s4] sm:$0xff] }
  0x18   :  { %4233 = vmatpush3.msra.mxu1 %v49_v6  ;;  %4259 = vmatpush3.msra.mxu0 %v314_v20  ;;  %v444_v35 = vld [vmem:[%s5319_s5] sm:$0xff]  ;;  %v3991_v45 = vld [vmem:[#allocation3] ss:$0 sm:$0xff]  ;;  %v3992_v51 = vld [vmem:[#allocation3 + $0x1] ss:$0 sm:$0xff] }
  0x19   :  { %4235 = vmatmul.mubr.msk.f32.vlgmr.msra.gmra.mxu1 %vm55_vm1, %v48_v7  ;;  %4237 = vmatprep.subr.msk.mxu1 %vm62_vm0, %v146_v8  ;;  %v3990_v52 = vld [vmem:[%s5322_s8] ss:$0 sm:$0xff]  ;;  %v3993_v63 = vld [vmem:[#allocation3 + $0x2] ss:$0 sm:$0xff]  ;;  %v3994_v4 = vld [vmem:[#allocation3 + $0x3] ss:$0 sm:$0xff] }
  0x1a   :  { %4238 = vmatpush3.msk.msra.mxu1 %vm62_vm0, %v146_v8  ;;  %4249 = vmatprep.mubr.msk.f32.mxu1 %vm55_vm1, %v47_v3 }
  0x1b   :  { %4239 = vmatprep.subr.mxu1 %v145_v9  ;;  %4260 = vmatprep.subr.mxu0 %v313_v22 }
  0x1c   :  { %4240 = vmatpush3.msra.mxu1 %v145_v9  ;;  %4261 = vmatpush3.msra.mxu0 %v313_v22 }
  0x1d   :  { %4241 = vmatprep.subr.mxu1 %v144_v10  ;;  %4262 = vmatprep.subr.mxu0 %v312_v24 }
  0x1e   :  { %4242 = vmatpush3.msra.mxu1 %v144_v10  ;;  %4263 = vmatpush3.msra.mxu0 %v312_v24 }
  0x1f   :  { %4243 = vmatprep.subr.mxu1 %v143_v11  ;;  %4264 = vmatprep.subr.mxu0 %v311_v26 }
  0x20   :  { %4244 = vmatpush3.msra.mxu1 %v143_v11  ;;  %4265 = vmatpush3.msra.mxu0 %v311_v26 }
  0x21   :  { %4245 = vmatprep.subr.mxu1 %v142_v12  ;;  %4266 = vmatprep.subr.mxu0 %v310_v28 }
  0x22   :  { %4246 = vmatpush3.msra.mxu1 %v142_v12  ;;  %4267 = vmatpush3.msra.mxu0 %v310_v28 }
  0x23   :  { %4247 = vmatprep.subr.mxu1 %v141_v13  ;;  %4268 = vmatprep.subr.mxu0 %v309_v30 }
  0x24   :  { %4248 = vmatpush3.msra.mxu1 %v141_v13  ;;  %4269 = vmatpush3.msra.mxu0 %v309_v30 }
  0x25   :  { %4250 = vmatmul.mubr.msk.f32.vlgmr.msra.gmra.mxu1 %vm55_vm1, %v48_v7  ;;  %4277 = vmatprep.subr.msk.mxu1 %vm329_vm2, %v454_v15  ;;  %vm801_vm1 = vcmask 130048  }
  0x26   :  { %4278 = vmatpush3.msk.msra.mxu1 %vm329_vm2, %v454_v15  ;;  %4270 = vmatprep.subr.mxu0 %v308_v32 }
  0x27   :  { %4279 = vmatprep.subr.mxu1 %v453_v17  ;;  %4271 = vmatpush3.msra.mxu0 %v308_v32 }
  0x28   :  { %4280 = vmatpush3.msra.mxu1 %v453_v17  ;;  %4272 = vmatprep.subr.mxu0 %v307_v34 }
  0x29   :  { %4281 = vmatprep.subr.mxu1 %v452_v19  ;;  %4273 = vmatpush3.msra.mxu0 %v307_v34 }
  0x2a   :  { %4282 = vmatpush3.msra.mxu1 %v452_v19 }
  0x2b   :  { %4283 = vmatprep.subr.mxu1 %v451_v21 }
  0x2c   :  { %4284 = vmatpush3.msra.mxu1 %v451_v21 }
  0x2d   :  { %4285 = vmatprep.subr.mxu1 %v450_v23 }
  0x2e   :  { %4286 = vmatpush3.msra.mxu1 %v450_v23 }
  0x2f   :  { %4287 = vmatprep.subr.mxu1 %v449_v25 }
  0x30   :  { %4288 = vmatpush3.msra.mxu1 %v449_v25 }
  0x31   :  { %4289 = vmatprep.subr.mxu1 %v448_v27 }
  0x32   :  { %4290 = vmatpush3.msra.mxu1 %v448_v27 }
  0x33   :  { %4291 = vmatprep.subr.mxu1 %v447_v29 }
  0x34   :  { %4292 = vmatpush3.msra.mxu1 %v447_v29  ;;  %v3995_v29 = vld [vmem:[%s5322_s8 + $0x1] ss:$0 sm:$0xff] }
  0x35   :  { %4293 = vmatprep.subr.mxu1 %v446_v31 }
  0x36   :  { %4294 = vmatpush3.msra.mxu1 %v446_v31 }
  0x37   :  { %4295 = vmatprep.subr.mxu1 %v445_v33 }
  0x38   :  { %4296 = vmatpush3.msra.mxu1 %v445_v33 }
  0x39   :  { %4297 = vmatprep.subr.mxu1 %v444_v35 }
  0x3a   :  { %4298 = vmatpush3.msra.mxu1 %v444_v35 }
  0xd9   :  { %v4236_v38 = vpop.f32.mrf.mxu1 }
  0xda   :  { %v236_v40 = vrot.slane %v4236_v38, 5  ;;  %v253_v41 = vrot.slane %v4236_v38, 6  ;;  %v270_v44 = vrot.slane %v4236_v38, 7  ;;  %v292_v9 = vmul.f32 %v4236_v38, %v3994_v4 }
  0xdb   :  { %v132_v39 = vpop.f32.mrf.mxu1 }
  0xdc   :  { %v235_v42 = vrot.slane %v132_v39, 5  ;;  %v252_v43 = vrot.slane %v132_v39, 6  ;;  %v269_v46 = vrot.slane %v132_v39, 7  ;;  %v291_v11 = vmul.f32 %v3994_v4, %v132_v39 }
  0xde   :  { %v238_v47 = vsel %vm237_vm3, %v235_v42, %v236_v40  ;;  %v239_v48 = vsel %vm237_vm3, %v236_v40, %v235_v42  ;;  %v255_v49 = vsel %vm254_vm5, %v252_v43, %v253_v41  ;;  %v256_v50 = vsel %vm254_vm5, %v253_v41, %v252_v43 }
  0xdf   :  { %v241_v53 = vsel %vm240_vm4, %v239_v48, 0.0  ;;  %v242_v54 = vsel %vm240_vm4, %v238_v47, 0.0  ;;  %v258_v55 = vsel %vm257_vm6, %v256_v50, 0.0  ;;  %v259_v56 = vsel %vm257_vm6, %v255_v49, 0.0 }
  0xe0   :  { %v248_v57 = vmul.f32 %v3991_v45, %v241_v53  ;;  %v249_v58 = vmul.f32 %v3991_v45, %v242_v54  ;;  %v265_v59 = vmul.f32 %v3992_v51, %v258_v55  ;;  %v266_v60 = vmul.f32 %v3992_v51, %v259_v56 }
  0xe1   :  { %v272_v61 = vsel %vm271_vm7, %v269_v46, %v270_v44  ;;  %v273_v62 = vsel %vm271_vm7, %v270_v44, %v269_v46  ;;  %vm949_vm3 = vcmask 663552  }
  0xe2   :  { %v250_v0 = vadd.f32 %v3990_v52, %v248_v57  ;;  %v251_v1 = vadd.f32 %v3990_v52, %v249_v58  ;;  %v275_v2 = vsel %vm274_vm8, %v273_v62, 0.0  ;;  %v276_v3 = vsel %vm274_vm8, %v272_v61, 0.0 }
  0xe3   :  { %v282_v6 = vmul.f32 %v3993_v63, %v275_v2  ;;  %v283_v7 = vmul.f32 %v3993_v63, %v276_v3  ;;  %v954_v62 = vsub.s32 1, %v4815_v37 }
  0xe4   :  { %v267_v5 = vadd.f32 %v265_v59, %v250_v0  ;;  %v268_v8 = vadd.f32 %v266_v60, %v251_v1 }
  0xe5   :  { %v4854_v27 = vpop.f32.mrf.mxu1 }
  0xe6   :  { %v284_v10 = vadd.f32 %v282_v6, %v267_v5  ;;  %v285_v12 = vadd.f32 %v283_v7, %v268_v8  ;;  %v4885_v6 = vld [vmem:[%s5320_s6 + $0x8] sm:$0xff]  ;;  %v4890_v7 = vld [vmem:[%s5320_s6] sm:$0xff] }
  0xe7   :  { %v4856_v28 = vpop.f32.mrf.mxu1 }
  0xe8   :  { %v293_v13 = vadd.f32 %v291_v11, %v284_v10  ;;  %v294_v14 = vadd.f32 %v292_v9, %v285_v12  ;;  %v1368_v10 = vsub.s32 2, %v4815_v37 }
  0xea   :  { %v295_v15 = vsub.f32 0.0, %v293_v13  ;;  %v296_v16 = vsub.f32 0.0, %v294_v14 }
  0xec   :  { %v297_v17 = vmul.f32 1.442695, %v295_v15  ;;  %v299_v18 = vmul.f32 1.442695, %v296_v16 }
  0xee   :  { %4523 = vpow2.f32 %v297_v17 }
  0xef   :  { %4525 = vpow2.f32 %v299_v18  ;;  %v1782_v18 = vsub.s32 3, %v4815_v37 }
  0xfb   :  { %v4524_v19 = vpop.eup %4523 }
  0xfc   :  { %v4526_v20 = vpop.eup %4525  ;;  %v301_v21 = vadd.f32 1.0, %v4524_v19 }
  0xfd   :  { %v302_v22 = vadd.f32 1.0, %v4526_v20 }
  0xfe   :  { %4527 = vrcp.f32 %v301_v21 }
  0xff   :  { %4529 = vrcp.f32 %v302_v22 }
 0x10b   :  { %v4528_v23 = vpop.eup %4527 }
 0x10c   :  { %v4530_v24 = vpop.eup %4529  ;;  %v4842_v25 = vmul.f32 %v4528_v23, %v293_v13  ;;  %v2196_v23 = vsub.s32 4, %v4815_v37 }
 0x10d   :  { %v4844_v26 = vmul.f32 %v4530_v24, %v294_v14 }
 0x10e   :  { %4274 = vmatprep.mubr.msk.f32.mxu0 %vm322_vm9, %v4842_v25  ;;  %4299 = vmatprep.mubr.msk.f32.mxu1 %vm322_vm9, %v4842_v25 }
 0x10f   :  { %4275 = vmatmul.mubr.msk.f32.vlgmr.msra.gmra.mxu0 %vm322_vm9, %v4844_v26  ;;  %4300 = vmatmul.mubr.msk.f32.vlgmr.msra.gmra.mxu1 %vm322_vm9, %v4844_v26 }
 0x1cf   :  { %v4276_v30 = vpop.f32.mrf.mxu0  ;;  %v4861_v31 = vpop.f32.mrf.mxu1 }
 0x1d0   :  { %v405_v32 = vadd.f32 %v4276_v30, %v3995_v29  ;;  %875 = vrot.lane.b32.xlu1 %v4861_v31, %s4634_s21  ;;  %v1090_v43 = vrot.slane %v4861_v31, 1 }
 0x1d1   :  { %v399_v33 = vpop.f32.mrf.mxu0  ;;  %v4865_v34 = vpop.f32.mrf.mxu1 }
 0x1d2   :  { %v415_v35 = vand.u32 2147483647, %v405_v32  ;;  %v400_v36 = vadd.f32 %v3995_v29, %v399_v33  ;;  %557 = vxpose.xlu0.b32.start.end [1/1] (short) (narrow) %v4865_v34, 16  ;;  %v409_v58 = vmax.f32 %v405_v32, 0.0  ;;  %vm411_vm12 = vcmp.ne.f32.partialorder %v405_v32, %v405_v32 }
 0x1d3   :  { %v972_v4 = vrot.slane %v4865_v34, 1  ;;  %v2610_v33 = vsub.s32 5, %v4815_v37 }
 0x1d4   :  { %v417_v38 = vsub.f32 0.0, %v415_v35  ;;  %v414_v39 = vand.u32 2147483647, %v400_v36  ;;  %799 = vrot.lane.b32.xlu1 %v4865_v34, %s4634_s21  ;;  %v408_v0 = vmax.f32 %v400_v36, 0.0  ;;  %vm410_vm13 = vcmp.ne.f32.partialorder %v400_v36, %v400_v36 }
 0x1d6   :  { %v420_v40 = vmul.f32 1.442695, %v417_v38  ;;  %v416_v41 = vsub.f32 0.0, %v414_v39 }
 0x1d7   :  { %674 = vxpose.xlu0.b32.start.end [1/1] (short) (narrow) %v4861_v31, 16 }
 0x1d8   :  { %4531 = vpow2.f32 %v420_v40  ;;  %v418_v42 = vmul.f32 1.442695, %v416_v41 }
 0x1da   :  { %4533 = vpow2.f32 %v418_v42 }
 0x1dc   :  { %1092 = vxpose.xlu0.b32.start.end [1/1] (short) (narrow) %v1090_v43, 16 }
 0x1e5   :  { %v4532_v44 = vpop.eup %4531 }
 0x1e6   :  { %v431_v45 = vadd.f32 1.0, %v4532_v44  ;;  %v434_v48 = vmul.f32 -0.5, %v4532_v44  ;;  %v437_v51 = vand.u32 2147483647, %v4532_v44 }
 0x1e7   :  { %v4534_v46 = vpop.eup %4533 }
 0x1e8   :  { %4535 = vlog2.f32 %v431_v45  ;;  %v422_v47 = vadd.f32 1.0, %v4534_v46  ;;  %v425_v49 = vmul.f32 -0.5, %v4534_v46  ;;  %v435_v50 = vadd.f32 1.0, %v434_v48 }
 0x1e9   :  { %v428_v54 = vand.u32 2147483647, %v4534_v46  ;;  %vm438_vm10 = vcmp.lt.f32.partialorder %v437_v51, 0.0004427343 }
 0x1ea   :  { %4537 = vlog2.f32 %v422_v47  ;;  %v426_v52 = vadd.f32 1.0, %v425_v49  ;;  %v436_v56 = vmul.f32 %v4532_v44, %v435_v50 }
 0x1eb   :  { %vm429_vm11 = vcmp.lt.f32.partialorder %v428_v54, 0.0004427343 }
 0x1ec   :  { %v427_v61 = vmul.f32 %v4534_v46, %v426_v52  ;;  %v3024_v52 = vsub.s32 6, %v4815_v37 }
 0x1f5   :  { %v4536_v53 = vpop.eup %4535 }
 0x1f6   :  { %v433_v55 = vmul.f32 0.6931472, %v4536_v53  ;;  %v3438_v53 = vsub.s32 7, %v4815_v37 }
 0x1f7   :  { %v4538_v57 = vpop.eup %4537 }
 0x1f8   :  { %v439_v59 = vsel %vm438_vm10, %v436_v56, %v433_v55  ;;  %v424_v60 = vmul.f32 0.6931472, %v4538_v57 }
 0x1f9   :  { %v441_v63 = vadd.f32 %v439_v59, %v409_v58 }
 0x1fa   :  { %v430_v1 = vsel %vm429_vm11, %v427_v61, %v424_v60 }
 0x1fb   :  { %v4875_v2 = vsel %vm411_vm12, %v405_v32, %v441_v63  ;;  %v440_v3 = vadd.f32 %v430_v1, %v408_v0 }
 0x1fc   :  { %v4880_v5 = vmul.f32 %v4875_v2, %v4844_v26  ;;  %v959_v8 = vrot.slane %v4875_v2, %v954_v62  ;;  %v1373_v17 = vrot.slane %v4875_v2, %v1368_v10  ;;  %v1787_v22 = vrot.slane %v4875_v2, %v1782_v18 }
 0x1fd   :  { %v4893_v9 = vsel %vm410_vm13, %v400_v36, %v440_v3  ;;  %974 = vxpose.xlu1.b32.start.end [1/1] (short) (narrow) %v972_v4, 16  ;;  %v2201_v39 = vrot.slane %v4875_v2, %v2196_v23  ;;  %v2615_v46 = vrot.slane %v4875_v2, %v2610_v33  ;;  %v3029_v55 = vrot.slane %v4875_v2, %v3024_v52 }
 0x1fe   :  { %v4898_v11 = vmul.f32 %v4893_v9, %v4842_v25  ;;  %4307 = vmatprep.subr.msk.mxu1 %vm62_vm0, %v4880_v5  ;;  %v955_v12 = vrot.slane %v4893_v9, %v954_v62  ;;  %v4906_v13 = vmul.f32 %v959_v8, %v4885_v6  ;;  %v4909_v14 = vmul.f32 %v959_v8, %v4890_v7 }
 0x1ff   :  { %4308 = vmatpush3.msk.msra.mxu1 %vm62_vm0, %v4880_v5  ;;  %v1369_v19 = vrot.slane %v4893_v9, %v1368_v10  ;;  %v4925_v20 = vmul.f32 %v1373_v17, %v4885_v6  ;;  %v4928_v21 = vmul.f32 %v1373_v17, %v4890_v7  ;;  %v1783_v30 = vrot.slane %v4893_v9, %v1782_v18 }
 0x200   :  { %4302 = vmatprep.subr.msk.mxu0 %vm62_vm0, %v4898_v11  ;;  %v4916_v15 = vmul.f32 %v955_v12, %v4885_v6  ;;  %v4919_v16 = vmul.f32 %v955_v12, %v4890_v7  ;;  %v4948_v36 = vmul.f32 %v1787_v22, %v4885_v6  ;;  %v4951_v38 = vmul.f32 %v1787_v22, %v4890_v7 }
 0x201   :  { %4303 = vmatpush3.msk.msra.mxu0 %vm62_vm0, %v4898_v11  ;;  %v4933_v24 = vmul.f32 %v1369_v19, %v4885_v6  ;;  %v4936_v29 = vmul.f32 %v1369_v19, %v4890_v7  ;;  %v4940_v32 = vmul.f32 %v1783_v30, %v4885_v6  ;;  %v4945_v35 = vmul.f32 %v1783_v30, %v4890_v7 }
 0x202   :  { %v2197_v40 = vrot.slane %v4893_v9, %v2196_v23  ;;  %v4962_v44 = vmul.f32 %v2201_v39, %v4885_v6  ;;  %v4965_v45 = vmul.f32 %v2201_v39, %v4890_v7  ;;  %v2611_v47 = vrot.slane %v4893_v9, %v2610_v33 }
 0x203   :  { %v4976_v50 = vmul.f32 %v2615_v46, %v4885_v6  ;;  %v4979_v51 = vmul.f32 %v2615_v46, %v4890_v7  ;;  %v3025_v54 = vrot.slane %v4893_v9, %v3024_v52  ;;  %v3439_v56 = vrot.slane %v4893_v9, %v3438_v53 }
 0x204   :  { %v4956_v41 = vmul.f32 %v2197_v40, %v4885_v6  ;;  %v4959_v42 = vmul.f32 %v2197_v40, %v4890_v7  ;;  %v4970_v48 = vmul.f32 %v2611_v47, %v4885_v6  ;;  %v4973_v49 = vmul.f32 %v2611_v47, %v4890_v7 }
 0x205   :  { %v4987_v57 = vmul.f32 %v3025_v54, %v4885_v6  ;;  %v4990_v58 = vmul.f32 %v3025_v54, %v4890_v7  ;;  %v3443_v59 = vrot.slane %v4875_v2, %v3438_v53  ;;  %v4994_v60 = vmul.f32 %v3029_v55, %v4885_v6 }
 0x206   :  { %v4997_v61 = vmul.f32 %v3029_v55, %v4890_v7  ;;  %v5000_v62 = vmul.f32 %v3439_v56, %v4885_v6  ;;  %v5003_v63 = vmul.f32 %v3439_v56, %v4890_v7  ;;  %v1386_v3 = vrot.slane %v4865_v34, 2 }
 0x207   :  { %v5006_v0 = vmul.f32 %v3443_v59, %v4885_v6  ;;  %v5009_v1 = vmul.f32 %v3443_v59, %v4890_v7  ;;  %v1918_v18 = vrot.slane %v4861_v31, 3  ;;  %v4635_v19 = vmov 0.0  }
 0x208   :  { %4312 = vmatprep.subr.mxu0 %v4635_v19  ;;  %4319 = vmatprep.subr.mxu1 %v4635_v19  ;;  %v2214_v22 = vrot.slane %v4865_v34, 4  ;;  %v2332_v23 = vrot.slane %v4861_v31, 4  ;;  %v539_v30 = vsub.s32 0, %v4815_v37  ;;  %v966_v37 = vmul.f32 1.442695, %v4916_v15 }
 0x209   :  { %1216 = vrot.lane.b32.xlu0 %v972_v4, %s4634_s21  ;;  %v1504_v4 = vrot.slane %v4861_v31, 2  ;;  %v964_v56 = vmul.f32 1.442695, %v4919_v16 }
 0x20a   :  { %v540_v33 = vrot.slane %v4893_v9, %v539_v30  ;;  %v544_v46 = vrot.slane %v4875_v2, %v539_v30  ;;  %v2628_v9 = vrot.slane %v4865_v34, 5 }
 0x20c   :  { %v546_v39 = vmul.f32 %v540_v33, %v4885_v6  ;;  %v545_v40 = vmul.f32 %v540_v33, %v4890_v7  ;;  %v548_v53 = vmul.f32 %v544_v46, %v4885_v6  ;;  %v547_v54 = vmul.f32 %v544_v46, %v4890_v7 }
 0x20d   :  { %v970_v6 = vmul.f32 1.442695, %v4906_v13  ;;  %v968_v7 = vmul.f32 1.442695, %v4909_v14  ;;  %v1006_v14 = vrot.slane %v4898_v11, 1 }
 0x20e   :  { %v551_v47 = vmul.f32 1.442695, %v546_v39  ;;  %v549_v52 = vmul.f32 1.442695, %v545_v40  ;;  %v555_v55 = vmul.f32 1.442695, %v548_v53 }
 0x20f   :  { %v553_v2 = vmul.f32 1.442695, %v547_v54 }
 0x210   :  { %4539 = vpow2.f32 %v551_v47 }
 0x211   :  { %4541 = vpow2.f32 %v549_v52 }
 0x212   :  { %4543 = vpow2.f32 %v966_v37 }
 0x213   :  { %4545 = vpow2.f32 %v555_v55 }
 0x214   :  { %4547 = vpow2.f32 %v964_v56 }
 0x215   :  { %4549 = vpow2.f32 %v553_v2 }
 0x216   :  { %4551 = vpow2.f32 %v970_v6 }
 0x217   :  { %4553 = vpow2.f32 %v968_v7  ;;  %v1124_v7 = vrot.slane %v4880_v5, 1 }
 0x21f   :  { %1290 = vrot.lane.b32.xlu1 %v1090_v43, %s4634_s21  ;;  %v1800_v43 = vrot.slane %v4865_v34, 3 }
 0x227   :  { %1388 = vxpose.xlu0.b32.start.end [1/1] (short) (narrow) %v1386_v3, 16 }
 0x242   :  { %v876_v59 = vpop.permute.xlu1 %875 }
 0x248   :  { %1506 = vxpose.xlu1.b32.start.end [1/1] (short) (narrow) %v1504_v4, 16 }
 0x24e   :  { %v573_v8 = vpop.trf.xlu0 }
 0x24f   :  { %4304 = vmatprep.mubr.msk.f32.mxu0 %vm589_vm14, %v573_v8 }
 0x252   :  { %v574_v10 = vpop.trf.xlu0 }
 0x253   :  { %4305 = vmatmul.mubr.msk.f32.vlgmr.msra.gmra.mxu0 %vm589_vm14, %v574_v10 }
 0x254   :  { %1630 = vrot.lane.b32.xlu0 %v1386_v3, %s4634_s21  ;;  %4316 = vmatprep.mubr.msk.f32.mxu0 %vm4636_vm15, %v4635_v19  ;;  %v4540_v3 = vpop.eup %4539 }
 0x255   :  { %v4542_v15 = vpop.eup %4541  ;;  %v791_v8 = vmul.f32 0.0, %v4540_v3 }
 0x256   :  { %v690_v12 = vpop.trf.xlu0 }
 0x257   :  { %4309 = vmatprep.mubr.msk.f32.mxu1 %vm589_vm14, %v690_v12  ;;  %v790_v12 = vmul.f32 0.0, %v4542_v15 }
 0x25a   :  { %v691_v17 = vpop.trf.xlu0 }
 0x25b   :  { %4310 = vmatmul.mubr.msk.f32.vlgmr.msra.gmra.mxu1 %vm589_vm14, %v691_v17  ;;  %v4544_v17 = vpop.eup %4543 }
 0x25c   :  { %4323 = vmatprep.mubr.msk.f32.mxu1 %vm4636_vm15, %v4635_v19 }
 0x25e   :  { %v1108_v55 = vpop.trf.xlu0 }
 0x262   :  { %v1109_v15 = vpop.trf.xlu0 }
 0x26a   :  { %1704 = vrot.lane.b32.xlu1 %v1504_v4, %s4634_s21  ;;  %v800_v4 = vpop.permute.xlu1 %799 }
 0x272   :  { %1802 = vxpose.xlu0.b32.start.end [1/1] (short) (narrow) %v1800_v43, 16 }
 0x293   :  { %1920 = vxpose.xlu1.b32.start.end [1/1] (short) (narrow) %v1918_v18, 16 }
 0x29f   :  { %2044 = vrot.lane.b32.xlu0 %v1800_v43, %s4634_s21 }
 0x2b5   :  { %2118 = vrot.lane.b32.xlu1 %v1918_v18, %s4634_s21  ;;  %v4546_v18 = vpop.eup %4545 }
 0x2b6   :  { %v4548_v13 = vpop.eup %4547  ;;  %v793_v40 = vmul.f32 0.0, %v4546_v18 }
 0x2b7   :  { %v4550_v39 = vpop.eup %4549 }
 0x2b8   :  { %v792_v53 = vmul.f32 0.0, %v4550_v39  ;;  %v4552_v54 = vpop.eup %4551 }
 0x2b9   :  { %v4554_v6 = vpop.eup %4553 }
 0x2bd   :  { %2216 = vxpose.xlu0.b32.start.end [1/1] (short) (narrow) %v2214_v22, 16 }
 0x2de   :  { %2334 = vxpose.xlu1.b32.start.end [1/1] (short) (narrow) %v2332_v23, 16 }
 0x2ea   :  { %2458 = vrot.lane.b32.xlu0 %v2214_v22, %s4634_s21  ;;  %v990_v22 = vpop.trf.xlu1 }
 0x2ee   :  { %v991_v47 = vpop.trf.xlu1 }
 0x300   :  { %2532 = vrot.lane.b32.xlu1 %v2332_v23, %s4634_s21 }
 0x308   :  { %2630 = vxpose.xlu0.b32.start.end [1/1] (short) (narrow) %v2628_v9, 16 }
 0x313   :  { %v4306_v16 = vpop.f32.mrf.mxu0 }
 0x314   :  { %v795_v10 = vadd.f32 %v4306_v16, %v791_v8  ;;  %v3160_v8 = vrot.slane %v4861_v31, 6  ;;  %v3456_v16 = vrot.slane %v4865_v34, 7 }
 0x315   :  { %v665_v43 = vpop.f32.mrf.mxu0 }
 0x316   :  { %v794_v23 = vadd.f32 %v790_v12, %v665_v43  ;;  %4313 = vmatpush3.msra.mxu0 %v795_v10  ;;  %v5050_v30 = vmul.f32 %v4544_v17, %v795_v10  ;;  %v3574_v10 = vrot.slane %v4861_v31, 7  ;;  %v1378_v12 = vmul.f32 1.442695, %v4936_v29 }
 0x317   :  { %4314 = vmatprep.subr.mxu0 %v4635_v19  ;;  %v1384_v17 = vmul.f32 1.442695, %v4925_v20  ;;  %v1382_v43 = vmul.f32 1.442695, %v4928_v21  ;;  %v1420_v21 = vrot.slane %v4898_v11, 2 }
 0x318   :  { %4315 = vmatpush3.msra.mxu0 %v794_v23  ;;  %v5054_v33 = vmul.f32 %v4548_v13, %v794_v23 }
 0x319   :  { %4317 = vmatmul.mubr.msk.f32.vlgmr.msra.gmra.mxu0 %vm801_vm1, %v800_v4  ;;  %4326 = vmatprep.subr.msk.mxu0 %vm62_vm0, %v1006_v14  ;;  %v2746_v4 = vrot.slane %v4861_v31, 5  ;;  %v1217_v31 = vpop.permute.xlu0 %1216 }
 0x31a   :  { %4327 = vmatpush3.msk.msra.mxu0 %vm62_vm0, %v1006_v14  ;;  %4328 = vmatprep.mubr.msk.f32.mxu0 %vm589_vm14, %v990_v22 }
 0x31b   :  { %v4311_v46 = vpop.f32.mrf.mxu1  ;;  %4336 = vmatprep.subr.mxu0 %v4635_v19 }
 0x31c   :  { %v797_v52 = vadd.f32 %v4311_v46, %v793_v40 }
 0x31d   :  { %v781_v37 = vpop.f32.mrf.mxu1  ;;  %4329 = vmatmul.mubr.msk.f32.vlgmr.msra.gmra.mxu0 %vm589_vm14, %v991_v47  ;;  %v1404_v29 = vpop.trf.xlu0 }
 0x31e   :  { %v796_v56 = vadd.f32 %v792_v53, %v781_v37  ;;  %4320 = vmatpush3.msra.mxu1 %v797_v52  ;;  %4340 = vmatprep.mubr.msk.f32.mxu0 %vm4636_vm15, %v4635_v19  ;;  %v5064_v2 = vmul.f32 %v4552_v54, %v797_v52 }
 0x31f   :  { %4321 = vmatprep.subr.mxu1 %v4635_v19 }
 0x320   :  { %4322 = vmatpush3.msra.mxu1 %v796_v56  ;;  %v5068_v3 = vmul.f32 %v4554_v6, %v796_v56 }
 0x321   :  { %4324 = vmatmul.mubr.msk.f32.vlgmr.msra.gmra.mxu1 %vm801_vm1, %v876_v59  ;;  %4331 = vmatprep.subr.msk.mxu1 %vm62_vm0, %v1124_v7  ;;  %v3042_v59 = vrot.slane %v4865_v34, 6  ;;  %v1405_v52 = vpop.trf.xlu0 }
 0x322   :  { %4332 = vmatpush3.msk.msra.mxu1 %vm62_vm0, %v1124_v7  ;;  %4333 = vmatprep.mubr.msk.f32.mxu1 %vm589_vm14, %v1108_v55 }
 0x323   :  { %4343 = vmatprep.subr.mxu1 %v4635_v19 }
 0x325   :  { %4334 = vmatmul.mubr.msk.f32.vlgmr.msra.gmra.mxu1 %vm589_vm14, %v1109_v15  ;;  %v1538_v15 = vrot.slane %v4880_v5, 2 }
 0x326   :  { %4347 = vmatprep.mubr.msk.f32.mxu1 %vm4636_vm15, %v4635_v19 }
 0x329   :  { %2748 = vxpose.xlu1.b32.start.end [1/1] (short) (narrow) %v2746_v4, 16 }
 0x335   :  { %2872 = vrot.lane.b32.xlu0 %v2628_v9, %s4634_s21  ;;  %v1380_v9 = vmul.f32 1.442695, %v4933_v24 }
 0x337   :  { %4555 = vpow2.f32 %v1380_v9 }
 0x338   :  { %4557 = vpow2.f32 %v1378_v12  ;;  %v1631_v12 = vpop.permute.xlu0 %1630 }
 0x339   :  { %4559 = vpow2.f32 %v1384_v17 }
 0x33a   :  { %4561 = vpow2.f32 %v1382_v43 }
 0x344   :  { %v4556_v24 = vpop.eup %4555 }
 0x345   :  { %v4558_v39 = vpop.eup %4557 }
 0x346   :  { %v4560_v54 = vpop.eup %4559 }
 0x347   :  { %v4562_v7 = vpop.eup %4561 }
 0x34b   :  { %2946 = vrot.lane.b32.xlu1 %v2746_v4, %s4634_s21 }
 0x353   :  { %3044 = vxpose.xlu0.b32.start.end [1/1] (short) (narrow) %v3042_v59, 16 }
 0x374   :  { %3162 = vxpose.xlu1.b32.start.end [1/1] (short) (narrow) %v3160_v8, 16 }
 0x380   :  { %3286 = vrot.lane.b32.xlu0 %v3042_v59, %s4634_s21  ;;  %v1792_v59 = vmul.f32 1.442695, %v4945_v35 }
 0x396   :  { %3360 = vrot.lane.b32.xlu1 %v3160_v8, %s4634_s21  ;;  %v1798_v8 = vmul.f32 1.442695, %v4948_v36  ;;  %v1834_v36 = vrot.slane %v4898_v11, 3 }
 0x39e   :  { %3458 = vxpose.xlu0.b32.start.end [1/1] (short) (narrow) %v3456_v16, 16 }
 0x3bf   :  { %3576 = vxpose.xlu1.b32.start.end [1/1] (short) (narrow) %v3574_v10, 16 }
 0x3cb   :  { %3700 = vrot.lane.b32.xlu0 %v3456_v16, %s4634_s21  ;;  %v1796_v16 = vmul.f32 1.442695, %v4951_v38 }
 0x3d9   :  { %v870_v18 = vpop.f32.mrf.mxu0 }
 0x3da   :  { %950 = vst.msk [vmem:[#allocation2] sm:$0x1] %vm949_vm3, %v870_v18 }
 0x3db   :  { %v4318_v34 = vpop.f32.mrf.mxu0 }
 0x3dd   :  { %v4330_v22 = vpop.f32.mrf.mxu0 }
 0x3de   :  { %v1213_v23 = vadd.f32 %v4330_v22, %v5050_v30 }
 0x3df   :  { %v1081_v13 = vpop.f32.mrf.mxu0 }
 0x3e0   :  { %v1212_v14 = vadd.f32 %v5054_v33, %v1081_v13  ;;  %4337 = vmatpush3.msra.mxu0 %v1213_v23  ;;  %v1623_v20 = vmul.f32 %v4556_v24, %v1213_v23  ;;  %v1291_v33 = vpop.permute.xlu1 %1290 }
 0x3e1   :  { %v945_v40 = vpop.f32.mrf.mxu1  ;;  %3774 = vrot.lane.b32.xlu1 %v3574_v10, %s4634_s21  ;;  %4338 = vmatprep.subr.mxu0 %v4635_v19 }
 0x3e2   :  { %951 = vst.msk [vmem:[#allocation2 + $0x8] sm:$0x1] %vm949_vm3, %v945_v40  ;;  %4339 = vmatpush3.msra.mxu0 %v1212_v14  ;;  %v1622_v46 = vmul.f32 %v4558_v39, %v1212_v14 }
 0x3e3   :  { %v4325_v30 = vpop.f32.mrf.mxu1  ;;  %4341 = vmatmul.mubr.msk.f32.vlgmr.msra.gmra.mxu0 %vm801_vm1, %v1217_v31  ;;  %4350 = vmatprep.subr.msk.mxu0 %vm62_vm0, %v1420_v21 }
 0x3e4   :  { %4351 = vmatpush3.msk.msra.mxu0 %vm62_vm0, %v1420_v21  ;;  %4352 = vmatprep.mubr.msk.f32.mxu0 %vm589_vm14, %v1404_v29  ;;  %v1522_v55 = vpop.trf.xlu1 }
 0x3e5   :  { %v4335_v47 = vpop.f32.mrf.mxu1  ;;  %4360 = vmatprep.subr.mxu0 %v4635_v19 }
 0x3e6   :  { %v1215_v53 = vadd.f32 %v4335_v47, %v5064_v2  ;;  %v1952_v47 = vrot.slane %v4880_v5, 3 }
 0x3e7   :  { %v1199_v37 = vpop.f32.mrf.mxu1  ;;  %4353 = vmatmul.mubr.msk.f32.vlgmr.msra.gmra.mxu0 %vm589_vm14, %v1405_v52 }
 0x3e8   :  { %v1214_v56 = vadd.f32 %v5068_v3, %v1199_v37  ;;  %4344 = vmatpush3.msra.mxu1 %v1215_v53  ;;  %4364 = vmatprep.mubr.msk.f32.mxu0 %vm4636_vm15, %v4635_v19  ;;  %v1625_v6 = vmul.f32 %v4560_v54, %v1215_v53  ;;  %v1523_v2 = vpop.trf.xlu1  ;;  %v1794_v3 = vmul.f32 1.442695, %v4940_v32  ;;  %v1818_v32 = vpop.trf.xlu0  ;;  %v2208_v54 = vmul.f32 1.442695, %v4956_v41 }
 0x3e9   :  { %4345 = vmatprep.subr.mxu1 %v4635_v19  ;;  %v2206_v37 = vmul.f32 1.442695, %v4959_v42 }
 0x3ea   :  { %4346 = vmatpush3.msra.mxu1 %v1214_v56  ;;  %v1624_v4 = vmul.f32 %v4562_v7, %v1214_v56  ;;  %4563 = vpow2.f32 %v1794_v3  ;;  %v2210_v56 = vmul.f32 1.442695, %v4965_v45 }
 0x3eb   :  { %4348 = vmatmul.mubr.msk.f32.vlgmr.msra.gmra.mxu1 %vm801_vm1, %v1291_v33  ;;  %4355 = vmatprep.subr.msk.mxu1 %vm62_vm0, %v1538_v15  ;;  %4565 = vpow2.f32 %v1792_v59 }
 0x3ec   :  { %4356 = vmatpush3.msk.msra.mxu1 %vm62_vm0, %v1538_v15  ;;  %4357 = vmatprep.mubr.msk.f32.mxu1 %vm589_vm14, %v1522_v55  ;;  %4567 = vpow2.f32 %v1798_v8  ;;  %v1705_v13 = vpop.permute.xlu1 %1704  ;;  %v1819_v14 = vpop.trf.xlu0  ;;  %v2212_v55 = vmul.f32 1.442695, %v4962_v44  ;;  %v2248_v44 = vrot.slane %v4898_v11, 4 }
 0x3ed   :  { %4367 = vmatprep.subr.mxu1 %v4635_v19  ;;  %4569 = vpow2.f32 %v1796_v16 }
 0x3ee   :  { %4571 = vpow2.f32 %v2208_v54 }
 0x3ef   :  { %4358 = vmatmul.mubr.msk.f32.vlgmr.msra.gmra.mxu1 %vm589_vm14, %v1523_v2  ;;  %4573 = vpow2.f32 %v2206_v37 }
 0x3f0   :  { %4371 = vmatprep.mubr.msk.f32.mxu1 %vm4636_vm15, %v4635_v19  ;;  %v1936_v21 = vpop.trf.xlu1  ;;  %4575 = vpow2.f32 %v2212_v55  ;;  %v2045_v15 = vpop.permute.xlu0 %2044 }
 0x3f1   :  { %4577 = vpow2.f32 %v2210_v56 }
 0x3f4   :  { %v1937_v53 = vpop.trf.xlu1  ;;  %v2232_v41 = vpop.trf.xlu0 }
 0x3f7   :  { %v4564_v18 = vpop.eup %4563 }
 0x3f8   :  { %v4566_v22 = vpop.eup %4565 }
 0x3f9   :  { %v4568_v39 = vpop.eup %4567 }
 0x3fa   :  { %v4570_v33 = vpop.eup %4569 }
 0x3fb   :  { %v4572_v3 = vpop.eup %4571 }
 0x3fc   :  { %v4574_v16 = vpop.eup %4573 }
 0x4a3   :  { %v1286_v10 = vpop.f32.mrf.mxu0 }
 0x4a4   :  { %1364 = vst.msk [vmem:[#allocation2 + $0x1] sm:$0x1] %vm949_vm3, %v1286_v10 }
 0x4a5   :  { %v4342_v9 = vpop.f32.mrf.mxu0 }
 0x4a7   :  { %v4354_v17 = vpop.f32.mrf.mxu0 }
 0x4a8   :  { %v1627_v43 = vadd.f32 %v4354_v17, %v1623_v20 }
 0x4a9   :  { %v1495_v34 = vpop.f32.mrf.mxu0 }
 0x4aa   :  { %v1626_v31 = vadd.f32 %v1622_v46, %v1495_v34  ;;  %4361 = vmatpush3.msra.mxu0 %v1627_v43  ;;  %v2037_v35 = vmul.f32 %v4564_v18, %v1627_v43  ;;  %v2233_v43 = vpop.trf.xlu0  ;;  %v4576_v34 = vpop.eup %4575 }
 0x4ab   :  { %v1360_v23 = vpop.f32.mrf.mxu1  ;;  %4362 = vmatprep.subr.mxu0 %v4635_v19 }
 0x4ac   :  { %1365 = vst.msk [vmem:[#allocation2 + $0x9] sm:$0x1] %vm949_vm3, %v1360_v23  ;;  %4363 = vmatpush3.msra.mxu0 %v1626_v31  ;;  %v2036_v38 = vmul.f32 %v4566_v22, %v1626_v31  ;;  %v4578_v23 = vpop.eup %4577 }
 0x4ad   :  { %v4349_v24 = vpop.f32.mrf.mxu1  ;;  %4365 = vmatmul.mubr.msk.f32.vlgmr.msra.gmra.mxu0 %vm801_vm1, %v1631_v12  ;;  %4374 = vmatprep.subr.msk.mxu0 %vm62_vm0, %v1834_v36  ;;  %v2119_v12 = vpop.permute.xlu1 %2118 }
 0x4ae   :  { %4375 = vmatpush3.msk.msra.mxu0 %vm62_vm0, %v1834_v36  ;;  %4376 = vmatprep.mubr.msk.f32.mxu0 %vm589_vm14, %v1818_v32  ;;  %v2366_v36 = vrot.slane %v4880_v5, 4 }
 0x4af   :  { %v4359_v29 = vpop.f32.mrf.mxu1  ;;  %4384 = vmatprep.subr.mxu0 %v4635_v19 }
 0x4b0   :  { %v1629_v20 = vadd.f32 %v4359_v29, %v1625_v6  ;;  %v2620_v29 = vmul.f32 1.442695, %v4973_v49 }
 0x4b1   :  { %v1613_v40 = vpop.f32.mrf.mxu1  ;;  %4377 = vmatmul.mubr.msk.f32.vlgmr.msra.gmra.mxu0 %vm589_vm14, %v1819_v14  ;;  %v2350_v31 = vpop.trf.xlu1  ;;  %v2626_v14 = vmul.f32 1.442695, %v4976_v50  ;;  %v2662_v50 = vrot.slane %v4898_v11, 5 }
 0x4b2   :  { %v1628_v46 = vadd.f32 %v1624_v4, %v1613_v40  ;;  %4368 = vmatpush3.msra.mxu1 %v1629_v20  ;;  %4388 = vmatprep.mubr.msk.f32.mxu0 %vm4636_vm15, %v4635_v19  ;;  %v2039_v30 = vmul.f32 %v4568_v39, %v1629_v20  ;;  %v2624_v20 = vmul.f32 1.442695, %v4979_v51 }
 0x4b3   :  { %4369 = vmatprep.subr.mxu1 %v4635_v19 }
 0x4b4   :  { %4370 = vmatpush3.msra.mxu1 %v1628_v46  ;;  %v2038_v52 = vmul.f32 %v4570_v33, %v1628_v46 }
 0x4b5   :  { %4372 = vmatmul.mubr.msk.f32.vlgmr.msra.gmra.mxu1 %vm801_vm1, %v1705_v13  ;;  %4379 = vmatprep.subr.msk.mxu1 %vm62_vm0, %v1952_v47  ;;  %v2351_v24 = vpop.trf.xlu1  ;;  %v2622_v13 = vmul.f32 1.442695, %v4970_v48 }
 0x4b6   :  { %4380 = vmatpush3.msk.msra.mxu1 %vm62_vm0, %v1952_v47  ;;  %4381 = vmatprep.mubr.msk.f32.mxu1 %vm589_vm14, %v1936_v21  ;;  %v2459_v21 = vpop.permute.xlu0 %2458 }
 0x4b7   :  { %4391 = vmatprep.subr.mxu1 %v4635_v19  ;;  %4579 = vpow2.f32 %v2622_v13 }
 0x4b8   :  { %4581 = vpow2.f32 %v2620_v29 }
 0x4b9   :  { %4382 = vmatmul.mubr.msk.f32.vlgmr.msra.gmra.mxu1 %vm589_vm14, %v1937_v53  ;;  %4583 = vpow2.f32 %v2626_v14  ;;  %v2533_v55 = vpop.permute.xlu1 %2532 }
 0x4ba   :  { %4395 = vmatprep.mubr.msk.f32.mxu1 %vm4636_vm15, %v4635_v19  ;;  %4585 = vpow2.f32 %v2624_v20  ;;  %v2646_v48 = vpop.trf.xlu0 }
 0x4c4   :  { %v4580_v33 = vpop.eup %4579 }
 0x4c5   :  { %v4582_v53 = vpop.eup %4581 }
 0x56d   :  { %v1700_v6 = vpop.f32.mrf.mxu0 }
 0x56e   :  { %1778 = vst.msk [vmem:[#allocation2 + $0x2] sm:$0x1] %vm949_vm3, %v1700_v6  ;;  %v2647_v6 = vpop.trf.xlu0 }
 0x56f   :  { %v4366_v7 = vpop.f32.mrf.mxu0 }
 0x571   :  { %v4378_v4 = vpop.f32.mrf.mxu0 }
 0x572   :  { %v2041_v2 = vadd.f32 %v4378_v4, %v2037_v35 }
 0x573   :  { %v1909_v59 = vpop.f32.mrf.mxu0 }
 0x574   :  { %v2040_v8 = vadd.f32 %v2036_v38, %v1909_v59  ;;  %4385 = vmatpush3.msra.mxu0 %v2041_v2  ;;  %v2451_v42 = vmul.f32 %v4572_v3, %v2041_v2  ;;  %v2764_v2 = vpop.trf.xlu1 }
 0x575   :  { %v1774_v10 = vpop.f32.mrf.mxu1  ;;  %4386 = vmatprep.subr.mxu0 %v4635_v19 }
 0x576   :  { %1779 = vst.msk [vmem:[#allocation2 + $0xa] sm:$0x1] %vm949_vm3, %v1774_v10  ;;  %4387 = vmatpush3.msra.mxu0 %v2040_v8  ;;  %v2450_v45 = vmul.f32 %v4574_v16, %v2040_v8  ;;  %v2780_v8 = vrot.slane %v4880_v5, 5  ;;  %v3036_v10 = vmul.f32 1.442695, %v4987_v57 }
 0x577   :  { %v4373_v9 = vpop.f32.mrf.mxu1  ;;  %4389 = vmatmul.mubr.msk.f32.vlgmr.msra.gmra.mxu0 %vm801_vm1, %v2045_v15  ;;  %4398 = vmatprep.subr.msk.mxu0 %vm62_vm0, %v2248_v44  ;;  %v4584_v15 = vpop.eup %4583 }
 0x578   :  { %4399 = vmatpush3.msk.msra.mxu0 %vm62_vm0, %v2248_v44  ;;  %4400 = vmatprep.mubr.msk.f32.mxu0 %vm589_vm14, %v2232_v41  ;;  %v4586_v41 = vpop.eup %4585  ;;  %v2765_v16 = vpop.trf.xlu1  ;;  %v3034_v44 = vmul.f32 1.442695, %v4990_v58  ;;  %4587 = vpow2.f32 %v3036_v10  ;;  %v3038_v9 = vmul.f32 1.442695, %v4997_v61 }
 0x579   :  { %v4383_v17 = vpop.f32.mrf.mxu1  ;;  %4408 = vmatprep.subr.mxu0 %v4635_v19 }
 0x57a   :  { %v2043_v18 = vadd.f32 %v4383_v17, %v2039_v30  ;;  %4589 = vpow2.f32 %v3034_v44 }
 0x57b   :  { %v2027_v32 = vpop.f32.mrf.mxu1  ;;  %4401 = vmatmul.mubr.msk.f32.vlgmr.msra.gmra.mxu0 %vm589_vm14, %v2233_v43  ;;  %v2873_v43 = vpop.permute.xlu0 %2872 }
 0x57c   :  { %v2042_v35 = vadd.f32 %v2038_v52, %v2027_v32  ;;  %4392 = vmatpush3.msra.mxu1 %v2043_v18  ;;  %4412 = vmatprep.mubr.msk.f32.mxu0 %vm4636_vm15, %v4635_v19  ;;  %v2453_v22 = vmul.f32 %v4576_v34, %v2043_v18 }
 0x57d   :  { %4393 = vmatprep.subr.mxu1 %v4635_v19 }
 0x57e   :  { %4394 = vmatpush3.msra.mxu1 %v2042_v35  ;;  %v2452_v38 = vmul.f32 %v4578_v23, %v2042_v35 }
 0x57f   :  { %4396 = vmatmul.mubr.msk.f32.vlgmr.msra.gmra.mxu1 %vm801_vm1, %v2119_v12  ;;  %4403 = vmatprep.subr.msk.mxu1 %vm62_vm0, %v2366_v36  ;;  %v3060_v57 = vpop.trf.xlu0 }
 0x580   :  { %4404 = vmatpush3.msk.msra.mxu1 %vm62_vm0, %v2366_v36  ;;  %4405 = vmatprep.mubr.msk.f32.mxu1 %vm589_vm14, %v2350_v31 }
 0x581   :  { %4415 = vmatprep.subr.mxu1 %v4635_v19 }
 0x583   :  { %4406 = vmatmul.mubr.msk.f32.vlgmr.msra.gmra.mxu1 %vm589_vm14, %v2351_v24  ;;  %v3061_v13 = vpop.trf.xlu0 }
 0x584   :  { %4419 = vmatprep.mubr.msk.f32.mxu1 %vm4636_vm15, %v4635_v19 }
 0x585   :  { %v4588_v32 = vpop.eup %4587 }
 0x637   :  { %v2114_v39 = vpop.f32.mrf.mxu0 }
 0x638   :  { %2192 = vst.msk [vmem:[#allocation2 + $0x3] sm:$0x1] %vm949_vm3, %v2114_v39 }
 0x639   :  { %v4390_v40 = vpop.f32.mrf.mxu0 }
 0x63b   :  { %v4402_v46 = vpop.f32.mrf.mxu0 }
 0x63c   :  { %v2455_v30 = vadd.f32 %v4402_v46, %v2451_v42 }
 0x63d   :  { %v2323_v47 = vpop.f32.mrf.mxu0 }
 0x63e   :  { %v2454_v52 = vadd.f32 %v2450_v45, %v2323_v47  ;;  %4409 = vmatpush3.msra.mxu0 %v2455_v30  ;;  %v2865_v49 = vmul.f32 %v4580_v33, %v2455_v30  ;;  %v3040_v45 = vmul.f32 1.442695, %v4994_v60  ;;  %v3076_v60 = vrot.slane %v4898_v11, 6 }
 0x63f   :  { %v2188_v54 = vpop.f32.mrf.mxu1  ;;  %4410 = vmatprep.subr.mxu0 %v4635_v19  ;;  %v3194_v30 = vrot.slane %v4880_v5, 6 }
 0x640   :  { %2193 = vst.msk [vmem:[#allocation2 + $0xb] sm:$0x1] %vm949_vm3, %v2188_v54  ;;  %4411 = vmatpush3.msra.mxu0 %v2454_v52  ;;  %v2864_v51 = vmul.f32 %v4582_v53, %v2454_v52  ;;  %4591 = vpow2.f32 %v3040_v45  ;;  %v3448_v52 = vmul.f32 1.442695, %v5003_v63  ;;  %v3452_v53 = vmul.f32 1.442695, %v5009_v1 }
 0x641   :  { %v4397_v37 = vpop.f32.mrf.mxu1  ;;  %4413 = vmatmul.mubr.msk.f32.vlgmr.msra.gmra.mxu0 %vm801_vm1, %v2459_v21  ;;  %4422 = vmatprep.subr.msk.mxu0 %vm62_vm0, %v2662_v50  ;;  %4593 = vpow2.f32 %v3038_v9  ;;  %v3608_v9 = vrot.slane %v4880_v5, 7 }
 0x642   :  { %4423 = vmatpush3.msk.msra.mxu0 %vm62_vm0, %v2662_v50  ;;  %4424 = vmatprep.mubr.msk.f32.mxu0 %vm589_vm14, %v2646_v48  ;;  %v3450_v48 = vmul.f32 1.442695, %v5000_v62 }
 0x643   :  { %v4407_v56 = vpop.f32.mrf.mxu1  ;;  %4432 = vmatprep.subr.mxu0 %v4635_v19 }
 0x644   :  { %v2457_v7 = vadd.f32 %v4407_v56, %v2453_v22  ;;  %v4590_v22 = vpop.eup %4589  ;;  %4595 = vpow2.f32 %v3450_v48 }
 0x645   :  { %v2441_v4 = vpop.f32.mrf.mxu1  ;;  %4425 = vmatmul.mubr.msk.f32.vlgmr.msra.gmra.mxu0 %vm589_vm14, %v2647_v6  ;;  %4597 = vpow2.f32 %v3448_v52 }
 0x646   :  { %v2456_v3 = vadd.f32 %v2452_v38, %v2441_v4  ;;  %4416 = vmatpush3.msra.mxu1 %v2457_v7  ;;  %4436 = vmatprep.mubr.msk.f32.mxu0 %vm4636_vm15, %v4635_v19  ;;  %v2867_v59 = vmul.f32 %v4584_v15, %v2457_v7  ;;  %v2947_v38 = vpop.permute.xlu1 %2946 }
 0x647   :  { %4417 = vmatprep.subr.mxu1 %v4635_v19 }
 0x648   :  { %4418 = vmatpush3.msra.mxu1 %v2456_v3  ;;  %v2866_v42 = vmul.f32 %v4586_v41, %v2456_v3 }
 0x649   :  { %4420 = vmatmul.mubr.msk.f32.vlgmr.msra.gmra.mxu1 %vm801_vm1, %v2533_v55  ;;  %4427 = vmatprep.subr.msk.mxu1 %vm62_vm0, %v2780_v8 }
 0x64a   :  { %4428 = vmatpush3.msk.msra.mxu1 %vm62_vm0, %v2780_v8  ;;  %4429 = vmatprep.mubr.msk.f32.mxu1 %vm589_vm14, %v2764_v2  ;;  %v3178_v39 = vpop.trf.xlu1 }
 0x64b   :  { %4439 = vmatprep.subr.mxu1 %v4635_v19 }
 0x64d   :  { %4430 = vmatmul.mubr.msk.f32.vlgmr.msra.gmra.mxu1 %vm589_vm14, %v2765_v16  ;;  %v4592_v14 = vpop.eup %4591 }
 0x64e   :  { %4443 = vmatprep.mubr.msk.f32.mxu1 %vm4636_vm15, %v4635_v19  ;;  %v4594_v46 = vpop.eup %4593  ;;  %v3179_v47 = vpop.trf.xlu1 }
 0x651   :  { %v4596_v56 = vpop.eup %4595 }
 0x652   :  { %v4598_v15 = vpop.eup %4597  ;;  %v3361_v3 = vpop.permute.xlu1 %3360 }
 0x656   :  { %v3592_v16 = vpop.trf.xlu1 }
 0x701   :  { %v2528_v12 = vpop.f32.mrf.mxu0 }
 0x702   :  { %2606 = vst.msk [vmem:[#allocation2 + $0x4] sm:$0x1] %vm949_vm3, %v2528_v12 }
 0x703   :  { %v4414_v17 = vpop.f32.mrf.mxu0 }
 0x704   :  { %v3593_v17 = vpop.trf.xlu1 }
 0x705   :  { %v4426_v18 = vpop.f32.mrf.mxu0 }
 0x706   :  { %v2869_v34 = vadd.f32 %v4426_v18, %v2865_v49  ;;  %v3454_v49 = vmul.f32 1.442695, %v5006_v0  ;;  %v3490_v0 = vrot.slane %v4898_v11, 7 }
 0x707   :  { %v2737_v31 = vpop.f32.mrf.mxu0 }
 0x708   :  { %v2868_v35 = vadd.f32 %v2864_v51, %v2737_v31  ;;  %4433 = vmatpush3.msra.mxu0 %v2869_v34  ;;  %v3279_v58 = vmul.f32 %v4588_v32, %v2869_v34  ;;  %4599 = vpow2.f32 %v3454_v49  ;;  %v3287_v51 = vpop.permute.xlu0 %3286 }
 0x709   :  { %v2602_v23 = vpop.f32.mrf.mxu1  ;;  %4434 = vmatprep.subr.mxu0 %v4635_v19  ;;  %4601 = vpow2.f32 %v3452_v53 }
 0x70a   :  { %2607 = vst.msk [vmem:[#allocation2 + $0xc] sm:$0x1] %vm949_vm3, %v2602_v23  ;;  %4435 = vmatpush3.msra.mxu0 %v2868_v35  ;;  %v3278_v61 = vmul.f32 %v4590_v22, %v2868_v35 }
 0x70b   :  { %v4421_v36 = vpop.f32.mrf.mxu1  ;;  %4437 = vmatmul.mubr.msk.f32.vlgmr.msra.gmra.mxu0 %vm801_vm1, %v2873_v43  ;;  %4446 = vmatprep.subr.msk.mxu0 %vm62_vm0, %v3076_v60 }
 0x70c   :  { %4447 = vmatpush3.msk.msra.mxu0 %vm62_vm0, %v3076_v60  ;;  %4448 = vmatprep.mubr.msk.f32.mxu0 %vm589_vm14, %v3060_v57  ;;  %v3474_v62 = vpop.trf.xlu0  ;;  %v3884_v57 = vld [vmem:[%s5321_s7 + $0x50] sm:$0x3] }
 0x70d   :  { %v4431_v24 = vpop.f32.mrf.mxu1  ;;  %4456 = vmatprep.subr.mxu0 %v4635_v19 }
 0x70e   :  { %v2871_v29 = vadd.f32 %v4431_v24, %v2867_v59  ;;  %v3883_v24 = vld [vmem:[%s5321_s7 + $0x48] sm:$0xff] }
 0x70f   :  { %v2855_v20 = vpop.f32.mrf.mxu1  ;;  %4449 = vmatmul.mubr.msk.f32.vlgmr.msra.gmra.mxu0 %vm589_vm14, %v3061_v13  ;;  %v3882_v13 = vld [vmem:[%s5321_s7 + $0x40] sm:$0xff] }
 0x710   :  { %v2870_v40 = vadd.f32 %v2866_v42, %v2855_v20  ;;  %4440 = vmatpush3.msra.mxu1 %v2871_v29  ;;  %4460 = vmatprep.mubr.msk.f32.mxu0 %vm4636_vm15, %v4635_v19  ;;  %v3281_v21 = vmul.f32 %v4592_v14, %v2871_v29  ;;  %v3475_v41 = vpop.trf.xlu0  ;;  %v3881_v29 = vld [vmem:[%s5321_s7 + $0x38] sm:$0xff]  ;;  %v3879_v14 = vld [vmem:[%s5321_s7 + $0x28] sm:$0xff]  ;;  %v3878_v20 = vld [vmem:[%s5321_s7 + $0x20] sm:$0xff] }
 0x711   :  { %4441 = vmatprep.subr.mxu1 %v4635_v19 }
 0x712   :  { %4442 = vmatpush3.msra.mxu1 %v2870_v40  ;;  %v3280_v33 = vmul.f32 %v4594_v46, %v2870_v40  ;;  %v3876_v40 = vld [vmem:[%s5321_s7 + $0x10] sm:$0xff]  ;;  %v3874_v46 = vld [vmem:[%s5321_s7] sm:$0xff] }
 0x713   :  { %4444 = vmatmul.mubr.msk.f32.vlgmr.msra.gmra.mxu1 %vm801_vm1, %v2947_v38  ;;  %4451 = vmatprep.subr.msk.mxu1 %vm62_vm0, %v3194_v30  ;;  %v3775_v38 = vpop.permute.xlu1 %3774 }
 0x714   :  { %4452 = vmatpush3.msk.msra.mxu1 %vm62_vm0, %v3194_v30  ;;  %4453 = vmatprep.mubr.msk.f32.mxu1 %vm589_vm14, %v3178_v39  ;;  %v3877_v39 = vld [vmem:[%s5321_s7 + $0x18] sm:$0xff]  ;;  %v3860_v30 = vsub.f32 0.0, %v4856_v28 }
 0x715   :  { %4463 = vmatprep.subr.mxu1 %v4635_v19  ;;  %v4600_v11 = vpop.eup %4599 }
 0x716   :  { %v4602_v45 = vpop.eup %4601 }
 0x717   :  { %4454 = vmatmul.mubr.msk.f32.vlgmr.msra.gmra.mxu1 %vm589_vm14, %v3179_v47  ;;  %v3861_v47 = vsub.f32 0.0, %v4854_v27 }
 0x718   :  { %4467 = vmatprep.mubr.msk.f32.mxu1 %vm4636_vm15, %v4635_v19 }
 0x719   :  { %v3864_v48 = vmul.f32 1.442695, %v3861_v47 }
 0x7cb   :  { %v2942_v54 = vpop.f32.mrf.mxu0 }
 0x7cc   :  { %3020 = vst.msk [vmem:[#allocation2 + $0x5] sm:$0x1] %vm949_vm3, %v2942_v54 }
 0x7cd   :  { %v4438_v50 = vpop.f32.mrf.mxu0 }
 0x7cf   :  { %v4450_v37 = vpop.f32.mrf.mxu0 }
 0x7d0   :  { %v3283_v55 = vadd.f32 %v4450_v37, %v3279_v58  ;;  %v3701_v58 = vpop.permute.xlu0 %3700  ;;  %v4066_v37 = vld [vmem:[%s5322_s8 + $0x2] ss:$0 sm:$0xff] }
 0x7d1   :  { %v3151_v6 = vpop.f32.mrf.mxu0 }
 0x7d2   :  { %v3282_v7 = vadd.f32 %v3278_v61, %v3151_v6  ;;  %4457 = vmatpush3.msra.mxu0 %v3283_v55  ;;  %v3693_v63 = vmul.f32 %v4596_v56, %v3283_v55  ;;  %v3856_v56 = vmul.f32 %v4066_v37, %v4842_v25  ;;  %v4067_v25 = vld [vmem:[%s5323_s9] ss:$0 sm:$0xff] }
 0x7d3   :  { %v3016_v4 = vpop.f32.mrf.mxu1  ;;  %4458 = vmatprep.subr.mxu0 %v4635_v19 }
 0x7d4   :  { %3021 = vst.msk [vmem:[#allocation2 + $0xd] sm:$0x1] %vm949_vm3, %v3016_v4  ;;  %4459 = vmatpush3.msra.mxu0 %v3282_v7  ;;  %v3692_v1 = vmul.f32 %v4598_v15, %v3282_v7 }
 0x7d5   :  { %v4445_v2 = vpop.f32.mrf.mxu1  ;;  %4461 = vmatmul.mubr.msk.f32.vlgmr.msra.gmra.mxu0 %vm801_vm1, %v3287_v51  ;;  %4470 = vmatprep.subr.msk.mxu0 %vm62_vm0, %v3490_v0 }
 0x7d6   :  { %4471 = vmatpush3.msk.msra.mxu0 %vm62_vm0, %v3490_v0  ;;  %4472 = vmatprep.mubr.msk.f32.mxu0 %vm589_vm14, %v3474_v62 }
 0x7d7   :  { %v4455_v59 = vpop.f32.mrf.mxu1  ;;  %4480 = vmatprep.subr.mxu0 %v4635_v19 }
 0x7d8   :  { %v3285_v8 = vadd.f32 %v4455_v59, %v3281_v21  ;;  %v3875_v21 = vld [vmem:[%s5321_s7 + $0x8] sm:$0xff] }
 0x7d9   :  { %v3269_v42 = vpop.f32.mrf.mxu1  ;;  %4473 = vmatmul.mubr.msk.f32.vlgmr.msra.gmra.mxu0 %vm589_vm14, %v3475_v41 }
 0x7da   :  { %v3284_v10 = vadd.f32 %v3280_v33, %v3269_v42  ;;  %4464 = vmatpush3.msra.mxu1 %v3285_v8  ;;  %4484 = vmatprep.mubr.msk.f32.mxu0 %vm4636_vm15, %v4635_v19  ;;  %v3695_v44 = vmul.f32 %v4600_v11, %v3285_v8  ;;  %v3862_v33 = vmul.f32 1.442695, %v3860_v30 }
 0x7db   :  { %4465 = vmatprep.subr.mxu1 %v4635_v19 }
 0x7dc   :  { %4466 = vmatpush3.msra.mxu1 %v3284_v10  ;;  %v3694_v12 = vmul.f32 %v4602_v45, %v3284_v10  ;;  %4603 = vpow2.f32 %v3862_v33 }
 0x7dd   :  { %4468 = vmatmul.mubr.msk.f32.vlgmr.msra.gmra.mxu1 %vm801_vm1, %v3361_v3  ;;  %4475 = vmatprep.subr.msk.mxu1 %vm62_vm0, %v3608_v9  ;;  %4605 = vpow2.f32 %v3864_v48 }
 0x7de   :  { %4476 = vmatpush3.msk.msra.mxu1 %vm62_vm0, %v3608_v9  ;;  %4477 = vmatprep.mubr.msk.f32.mxu1 %vm589_vm14, %v3592_v16  ;;  %vm3976_vm0 = vcmask 39936  }
 0x7df   :  { %4487 = vmatprep.subr.mxu1 %v4635_v19 }
 0x7e1   :  { %4478 = vmatmul.mubr.msk.f32.vlgmr.msra.gmra.mxu1 %vm589_vm14, %v3593_v17 }
 0x7e2   :  { %4491 = vmatprep.mubr.msk.f32.mxu1 %vm4636_vm15, %v4635_v19 }
 0x7e9   :  { %v4604_v52 = vpop.eup %4603 }
 0x7ea   :  { %v3866_v49 = vadd.f32 1.0, %v4604_v52  ;;  %v4606_v53 = vpop.eup %4605 }
 0x7eb   :  { %v3867_v54 = vadd.f32 1.0, %v4606_v53 }
 0x7ec   :  { %4607 = vrcp.f32 %v3866_v49 }
 0x7ed   :  { %4609 = vrcp.f32 %v3867_v54 }
 0x7f9   :  { %v4608_v55 = vpop.eup %4607 }
 0x7fa   :  { %v3870_v7 = vmul.f32 %v4608_v55, %v4856_v28  ;;  %v4610_v0 = vpop.eup %4609 }
 0x7fb   :  { %v3871_v3 = vmul.f32 %v4610_v0, %v4854_v27 }
 0x895   :  { %v3356_v43 = vpop.f32.mrf.mxu0 }
 0x896   :  { %3434 = vst.msk [vmem:[#allocation2 + $0x6] sm:$0x1] %vm949_vm3, %v3356_v43 }
 0x897   :  { %v4462_v5 = vpop.f32.mrf.mxu0 }
 0x899   :  { %v4474_v18 = vpop.f32.mrf.mxu0 }
 0x89a   :  { %v3697_v34 = vadd.f32 %v4474_v18, %v3693_v63 }
 0x89b   :  { %v3565_v32 = vpop.f32.mrf.mxu0 }
 0x89c   :  { %v3696_v31 = vadd.f32 %v3692_v1, %v3565_v32  ;;  %4481 = vmatpush3.msra.mxu0 %v3697_v34  ;;  %v3857_v1 = vmul.f32 %v4066_v37, %v4844_v26 }
 0x89d   :  { %v3430_v35 = vpop.f32.mrf.mxu1  ;;  %4482 = vmatprep.subr.mxu0 %v4635_v19 }
 0x89e   :  { %3435 = vst.msk [vmem:[#allocation2 + $0xe] sm:$0x1] %vm949_vm3, %v3430_v35  ;;  %4483 = vmatpush3.msra.mxu0 %v3696_v31 }
 0x89f   :  { %v4469_v22 = vpop.f32.mrf.mxu1  ;;  %4485 = vmatmul.mubr.msk.f32.vlgmr.msra.gmra.mxu0 %vm801_vm1, %v3701_v58  ;;  %4494 = vmatprep.subr.msk.mxu0 %vm329_vm2, %v3884_v57 }
 0x8a0   :  { %4495 = vmatpush3.msk.msra.mxu0 %vm329_vm2, %v3884_v57 }
 0x8a1   :  { %v4479_v23 = vpop.f32.mrf.mxu1  ;;  %4496 = vmatprep.subr.mxu0 %v3883_v24 }
 0x8a2   :  { %v3699_v60 = vadd.f32 %v4479_v23, %v3695_v44  ;;  %4497 = vmatpush3.msra.mxu0 %v3883_v24 }
 0x8a3   :  { %v3683_v61 = vpop.f32.mrf.mxu1  ;;  %4498 = vmatprep.subr.mxu0 %v3882_v13 }
 0x8a4   :  { %v3698_v36 = vadd.f32 %v3694_v12, %v3683_v61  ;;  %4488 = vmatpush3.msra.mxu1 %v3699_v60  ;;  %4499 = vmatpush3.msra.mxu0 %v3882_v13 }
 0x8a5   :  { %4489 = vmatprep.subr.mxu1 %v4635_v19  ;;  %v3880_v19 = vld [vmem:[%s5321_s7 + $0x30] sm:$0xff]  ;;  %4500 = vmatprep.subr.mxu0 %v3881_v29 }
 0x8a6   :  { %4490 = vmatpush3.msra.mxu1 %v3698_v36  ;;  %4501 = vmatpush3.msra.mxu0 %v3881_v29 }
 0x8a7   :  { %4492 = vmatmul.mubr.msk.f32.vlgmr.msra.gmra.mxu1 %vm801_vm1, %v3775_v38  ;;  %4502 = vmatprep.subr.mxu0 %v3880_v19 }
 0x8a8   :  { %4503 = vmatpush3.msra.mxu0 %v3880_v19 }
 0x8a9   :  { %4504 = vmatprep.subr.mxu0 %v3879_v14 }
 0x8aa   :  { %4505 = vmatpush3.msra.mxu0 %v3879_v14 }
 0x8ab   :  { %4506 = vmatprep.subr.mxu0 %v3878_v20 }
 0x8ac   :  { %4507 = vmatpush3.msra.mxu0 %v3878_v20 }
 0x8ad   :  { %4508 = vmatprep.subr.mxu0 %v3877_v39 }
 0x8ae   :  { %4509 = vmatpush3.msra.mxu0 %v3877_v39 }
 0x8af   :  { %4510 = vmatprep.subr.mxu0 %v3876_v40 }
 0x8b0   :  { %4511 = vmatpush3.msra.mxu0 %v3876_v40 }
 0x8b1   :  { %4512 = vmatprep.subr.mxu0 %v3875_v21 }
 0x8b2   :  { %4513 = vmatpush3.msra.mxu0 %v3875_v21 }
 0x8b3   :  { %4514 = vmatprep.subr.mxu0 %v3874_v46 }
 0x8b4   :  { %4515 = vmatpush3.msra.mxu0 %v3874_v46 }
 0x95f   :  { %v3770_v50 = vpop.f32.mrf.mxu0 }
 0x960   :  { %3848 = vst.msk [vmem:[#allocation2 + $0x7] sm:$0x1] %vm949_vm3, %v3770_v50 }
 0x961   :  { %v4486_v51 = vpop.f32.mrf.mxu0 }
 0x967   :  { %v3844_v6 = vpop.f32.mrf.mxu1  ;;  %v3850_v62 = vld [vmem:[#allocation2] sm:$0xff] }
 0x968   :  { %3849 = vst.msk [vmem:[#allocation2 + $0xf] sm:$0x1] %vm949_vm3, %v3844_v6  ;;  %v3858_v63 = vadd.f32 %v3856_v56, %v3850_v62 }
 0x969   :  { %v4493_v15 = vpop.f32.mrf.mxu1 }
 0x96a   :  { %v3872_v4 = vmul.f32 %v3870_v7, %v3858_v63 }
 0x96c   :  { %4516 = vmatprep.mubr.msk.f32.mxu0 %vm322_vm9, %v3872_v4 }
 0x96f   :  { %v3851_v2 = vld [vmem:[#allocation2 + $0x8] sm:$0xff] }
 0x970   :  { %v3859_v59 = vadd.f32 %v3857_v1, %v3851_v2 }
 0x972   :  { %v3873_v41 = vmul.f32 %v3871_v3, %v3859_v59 }
 0x974   :  { %4517 = vmatmul.mubr.msk.f32.vlgmr.msra.gmra.mxu0 %vm322_vm9, %v3873_v41 }
 0xa34   :  { %v4518_v28 = vpop.f32.mrf.mxu0 }
 0xa35   :  { %v3973_v8 = vadd.f32 %v4518_v28, %v4067_v25 }
 0xa36   :  { %v3967_v11 = vpop.f32.mrf.mxu0 }
 0xa37   :  { %3978 = vst.msk [vmem:[%s5324_s10 + $0x8] sm:$0xff] %vm3976_vm0, %v3973_v8  ;;  %v3968_v26 = vadd.f32 %v4067_v25, %v3967_v11 }
 0xa39   :  { %3977 = vst.msk [vmem:[%s5324_s10] sm:$0xff] %vm3976_vm0, %v3968_v26 }
 0xa3a   :  { %3983 = vsyncpa [#allocation4], 1 }

</bundles_post_ra>
